<compile_context>
chip_gen: v7x
topology: tpu7x:2x2x1
jax: 0.10.0
libtpu: 0.0.40
codegen_flags: <defaults>
</compile_context>

<pallas_src>
import functools

import jax
import jax.numpy as jnp
from jax import lax
from jax.experimental import pallas as pl
from jax.experimental.pallas import tpu as pltpu

SEQ = 8           # sequence length
INPUT_SIZE = 16   # LSTM input feature size
HIDDEN = 64       # hidden size (hard-coded by h0 = zeros(1, 64) in forward())
HIDDEN_PAD = 128  # lane-aligned padded gate width (one full vreg lane dim)
FC1 = 16          # fc1 output features
FC2 = 1           # fc2 output features


def _sigmoid(x):
    # EUP-friendly sigmoid: tanh runs on the EUP slot and co-issues with the
    # VPU gate math; numerically identical to 1/(1+exp(-x)) within f32 ulps.
    return 0.5 * jnp.tanh(0.5 * x) + 0.5


def rnn_lstm_kernel(xb_ref, wih_ref, whh_ref, w1_ref, epi_ref, out_ref):
    """Single-invocation kernel: LSTM over time + fc1/relu + fc2/sigmoid.

    xb_ref  : (T, D+1)      input sequence with a trailing ones column
    wih_ref : (D+1, 4*HP)   transposed weight_ih_l0 with (b_ih+b_hh) row
                            appended; each gate block padded to 128 lanes
    whh_ref : (H, 4*HP)     transposed weight_hh_l0, gate-padded lanes,
                            NO sublane (K) padding
    w1_ref  : (H, 16)       fc1 weight (transposed)
    epi_ref : (3, 16)       row 0 = b1, row 1 = w2, row 2 = [b2, 0, ...]
    out_ref : (T, 1)        sigmoid(fc2(relu(fc1(lstm_out))))
    """
    T = xb_ref.shape[0]
    H = whh_ref.shape[0]       # 64 real hidden units
    HP = HIDDEN_PAD            # 128-lane gate stride

    # Hoisted input projection (bias folded in): one MXU matmul.
    xg = jnp.dot(xb_ref[...], wih_ref[...],
                 preferred_element_type=jnp.float32)            # (T, 4*HP)

    # h0 = zeros, c0 = zeros (matches torch.zeros(1, 64)); carried in vregs.
    h = jnp.zeros((1, H), jnp.float32)
    c = jnp.zeros((1, H), jnp.float32)

    z1_rows = []
    # T is small and static: fully unrolled; no per-step VMEM round trips.
    for t in range(T):
        # Recurrent matmul fed straight from the VMEM ref (no 128 KiB value
        # kept live across the unrolled loop).
        gates = xg[t:t + 1, :] + jnp.dot(
            h, whh_ref[...], preferred_element_type=jnp.float32)  # (1, 4*HP)
        # Each gate block starts on a vreg boundary; only the 64 real lanes
        # are read (aligned-start, half-width slices, no rotates).
        i_g = _sigmoid(gates[:, 0 * HP:0 * HP + H])
        f_g = _sigmoid(gates[:, 1 * HP:1 * HP + H])
        g_g = jnp.tanh(gates[:, 2 * HP:2 * HP + H])
        o_g = _sigmoid(gates[:, 3 * HP:3 * HP + H])

        c = f_g * c + i_g * g_g
        h = o_g * jnp.tanh(c)

        # fc1 partial for this step: off the recurrence critical path, the
        # scheduler hides it in the slack between dependent steps.
        z1_rows.append(jnp.dot(h, w1_ref[...],
                               preferred_element_type=jnp.float32))  # (1, 16)

    z1 = jnp.concatenate(z1_rows, axis=0)                        # (T, 16)

    b1 = epi_ref[0:1, :]                                         # (1, 16)
    w2 = epi_ref[1:2, :]                                         # (1, 16)
    b2 = epi_ref[2:3, 0:1]                                       # (1, 1)

    z1 = jnp.maximum(z1 + b1, 0.0)
    # fc2 (16 -> 1) as VPU multiply + lane reduction (no N=1 MXU matmul).
    z2 = jnp.sum(z1 * w2, axis=-1, keepdims=True) + b2           # (T, 1)
    out_ref[...] = _sigmoid(z2)


@functools.partial(jax.jit, static_argnames=())
def rnn_classifier_lstm(x, w_ih, w_hh, b_ih, b_hh, w1, b1, w2, b2):
    """Wrapper: transposes / gate-pads params, folds biases, calls the kernel.

    PyTorch parameter shapes (as created by nn.LSTM / nn.Linear):
      w_ih : (4H, D),  w_hh : (4H, H),  b_ih, b_hh : (4H,)
      w1   : (16, H),  b1 : (16,)
      w2   : (1, 16),  b2 : (1,)
    """
    x = x.astype(jnp.float32)
    T, D = x.shape
    H = w_hh.shape[1]
    HP = HIDDEN_PAD

    wih_t = jnp.transpose(w_ih).astype(jnp.float32)              # (D, 4H)
    whh_t = jnp.transpose(w_hh).astype(jnp.float32)              # (H, 4H)
    b = (b_ih + b_hh).astype(jnp.float32).reshape(1, 4 * H)      # (1, 4H)

    def pad_gates(a):
        # (rows, 4H) -> (rows, 4*HP): each gate block zero-padded to 128 lanes.
        parts = [jnp.pad(a[:, g * H:(g + 1) * H], ((0, 0), (0, HP - H)))
                 for g in range(4)]
        return jnp.concatenate(parts, axis=-1)

    # Fold bias into the input projection: bias row appended to wih, ones
    # column appended to x.
    wih_ext = jnp.concatenate([pad_gates(wih_t), pad_gates(b)], axis=0)  # (D+1, 4*HP)
    xb = jnp.concatenate([x, jnp.ones((T, 1), jnp.float32)], axis=-1)    # (T, D+1)

    whh_p = pad_gates(whh_t)                                     # (H, 4*HP)
    w1_t = jnp.transpose(w1).astype(jnp.float32)                 # (H, 16)

    # Coalesced epilogue params: one small VMEM slab instead of 3 DMAs.
    epi = jnp.zeros((3, FC1), jnp.float32)
    epi = epi.at[0, :].set(b1.astype(jnp.float32))
    epi = epi.at[1, :].set(w2.astype(jnp.float32).reshape(-1))
    epi = epi.at[2, 0].set(b2.astype(jnp.float32)[0])

    vmem = pl.BlockSpec(memory_space=pltpu.MemorySpace.VMEM)

    out = pl.pallas_call(
        rnn_lstm_kernel,
        out_shape=jax.ShapeDtypeStruct((T, 1), jnp.float32),
        in_specs=[vmem] * 5,
        out_specs=vmem,
    )(xb, wih_ext, whh_p, w1_t, epi)
    return out


def _reference(x, w_ih, w_hh, b_ih, b_hh, w1, b1, w2, b2):
    """Pure-JAX reference matching PyTorch nn.LSTM semantics."""
    x = x.astype(jnp.float32)
    H = w_hh.shape[1]
    h = jnp.zeros((H,), jnp.float32)
    c = jnp.zeros((H,), jnp.float32)

    def step(carry, x_t):
        h, c = carry
        gates = w_ih @ x_t + b_ih + w_hh @ h + b_hh
        i = jax.nn.sigmoid(gates[0 * H:1 * H])
        f = jax.nn.sigmoid(gates[1 * H:2 * H])
        g = jnp.tanh(gates[2 * H:3 * H])
        o = jax.nn.sigmoid(gates[3 * H:4 * H])
        c = f * c + i * g
        h = o * jnp.tanh(c)
        return (h, c), h

    _, hs = lax.scan(step, (h, c), x)                 # (T, H)
    z1 = jnp.maximum(hs @ w1.T + b1, 0.0)
    z2 = z1 @ w2.T + b2
    return jax.nn.sigmoid(z2)


def _init_params(key, input_size, hidden_size):
    """Deterministic PyTorch-style uniform(-1/sqrt(fan), 1/sqrt(fan)) init."""
    ks = jax.random.split(key, 8)
    s_lstm = 1.0 / jnp.sqrt(hidden_size)
    s_fc1 = 1.0 / jnp.sqrt(hidden_size)
    s_fc2 = 1.0 / jnp.sqrt(FC1)
    w_ih = jax.random.uniform(ks[0], (4 * hidden_size, input_size),
                              jnp.float32, -s_lstm, s_lstm)
    w_hh = jax.random.uniform(ks[1], (4 * hidden_size, hidden_size),
                              jnp.float32, -s_lstm, s_lstm)
    b_ih = jax.random.uniform(ks[2], (4 * hidden_size,), jnp.float32,
                              -s_lstm, s_lstm)
    b_hh = jax.random.uniform(ks[3], (4 * hidden_size,), jnp.float32,
                              -s_lstm, s_lstm)
    w1 = jax.random.uniform(ks[4], (FC1, hidden_size), jnp.float32,
                            -s_fc1, s_fc1)
    b1 = jax.random.uniform(ks[5], (FC1,), jnp.float32, -s_fc1, s_fc1)
    w2 = jax.random.uniform(ks[6], (FC2, FC1), jnp.float32, -s_fc2, s_fc2)
    b2 = jax.random.uniform(ks[7], (FC2,), jnp.float32, -s_fc2, s_fc2)
    return w_ih, w_hh, b_ih, b_hh, w1, b1, w2, b2


if __name__ == "__main__":
    key = jax.random.PRNGKey(0)
    k_x, k_p = jax.random.split(key)

    # Unbatched input sequence: (seq_len, input_size)
    x = jax.random.normal(k_x, (SEQ, INPUT_SIZE), jnp.float32)
    params = _init_params(k_p, INPUT_SIZE, HIDDEN)

    out = rnn_classifier_lstm(x, *params)
    out = jax.block_until_ready(out)

    ref = _reference(x, *params)
    assert out.shape == (SEQ, 1), out.shape
    assert jnp.allclose(out, ref, atol=1e-5, rtol=1e-5), (
        f"max abs err {jnp.max(jnp.abs(out - ref))}")

    print("KERNEL_OK")
</pallas_src>

<mosaic_0001>
module attributes {stable_mosaic.version = 11 : i64} {
  func.func @rnn_lstm_kernel(%arg0: memref<8x17xf32, #tpu.memory_space<vmem>>, %arg1: memref<17x512xf32, #tpu.memory_space<vmem>>, %arg2: memref<64x512xf32, #tpu.memory_space<vmem>>, %arg3: memref<64x16xf32, #tpu.memory_space<vmem>>, %arg4: memref<3x16xf32, #tpu.memory_space<vmem>>, %arg5: memref<8x1xf32, #tpu.memory_space<vmem>>) attributes {dimension_semantics = [], scalar_prefetch = 0 : i64, scratch_operands = 0 : i64, tpu.core_type = #tpu.core_type<tc>} {
    %c0 = arith.constant 0 : index
    %c0_0 = arith.constant 0 : index
    %0 = vector.load %arg0[%c0, %c0_0] : memref<8x17xf32, #tpu.memory_space<vmem>>, vector<8x17xf32>
    %c0_1 = arith.constant 0 : index
    %c0_2 = arith.constant 0 : index
    %1 = vector.load %arg1[%c0_1, %c0_2] : memref<17x512xf32, #tpu.memory_space<vmem>>, vector<17x512xf32>
    %cst = arith.constant dense<0.000000e+00> : vector<8x512xf32>
    %2 = tpu.matmul %0, %1, %cst {dimension_numbers = #tpu.dot_dimension_numbers<[1], [0], [0], [1], [0, 0, 1, 1], [], []>} : vector<8x17xf32>, vector<17x512xf32>, vector<8x512xf32> -> vector<8x512xf32>
    %cst_3 = arith.constant 0.000000e+00 : f32
    %3 = vector.broadcast %cst_3 : f32 to vector<1x64xf32>
    %cst_4 = arith.constant 0.000000e+00 : f32
    %4 = vector.broadcast %cst_4 : f32 to vector<1x64xf32>
    %5 = vector.extract_strided_slice %2 {offsets = [0, 0], sizes = [1, 512], strides = [1, 1]} : vector<8x512xf32> to vector<1x512xf32>
    %c0_5 = arith.constant 0 : index
    %c0_6 = arith.constant 0 : index
    %6 = vector.load %arg2[%c0_5, %c0_6] : memref<64x512xf32, #tpu.memory_space<vmem>>, vector<64x512xf32>
    %cst_7 = arith.constant dense<0.000000e+00> : vector<1x512xf32>
    %7 = tpu.matmul %3, %6, %cst_7 {dimension_numbers = #tpu.dot_dimension_numbers<[1], [0], [0], [1], [0, 0, 1, 1], [], []>} : vector<1x64xf32>, vector<64x512xf32>, vector<1x512xf32> -> vector<1x512xf32>
    %8 = arith.addf %5, %7 : vector<1x512xf32>
    %9 = vector.extract_strided_slice %8 {offsets = [0, 0], sizes = [1, 64], strides = [1, 1]} : vector<1x512xf32> to vector<1x64xf32>
    %cst_8 = arith.constant 5.000000e-01 : f32
    %10 = vector.broadcast %cst_8 : f32 to vector<1x64xf32>
    %11 = arith.mulf %10, %9 : vector<1x64xf32>
    %12 = math.tanh %11 : vector<1x64xf32>
    %cst_9 = arith.constant 5.000000e-01 : f32
    %13 = vector.broadcast %cst_9 : f32 to vector<1x64xf32>
    %14 = arith.mulf %13, %12 : vector<1x64xf32>
    %cst_10 = arith.constant 5.000000e-01 : f32
    %15 = vector.broadcast %cst_10 : f32 to vector<1x64xf32>
    %16 = arith.addf %14, %15 : vector<1x64xf32>
    %17 = vector.extract_strided_slice %8 {offsets = [0, 128], sizes = [1, 64], strides = [1, 1]} : vector<1x512xf32> to vector<1x64xf32>
    %cst_11 = arith.constant 5.000000e-01 : f32
    %18 = vector.broadcast %cst_11 : f32 to vector<1x64xf32>
    %19 = arith.mulf %18, %17 : vector<1x64xf32>
    %20 = math.tanh %19 : vector<1x64xf32>
    %cst_12 = arith.constant 5.000000e-01 : f32
    %21 = vector.broadcast %cst_12 : f32 to vector<1x64xf32>
    %22 = arith.mulf %21, %20 : vector<1x64xf32>
    %cst_13 = arith.constant 5.000000e-01 : f32
    %23 = vector.broadcast %cst_13 : f32 to vector<1x64xf32>
    %24 = arith.addf %22, %23 : vector<1x64xf32>
    %25 = vector.extract_strided_slice %8 {offsets = [0, 256], sizes = [1, 64], strides = [1, 1]} : vector<1x512xf32> to vector<1x64xf32>
    %26 = math.tanh %25 : vector<1x64xf32>
    %27 = vector.extract_strided_slice %8 {offsets = [0, 384], sizes = [1, 64], strides = [1, 1]} : vector<1x512xf32> to vector<1x64xf32>
    %cst_14 = arith.constant 5.000000e-01 : f32
    %28 = vector.broadcast %cst_14 : f32 to vector<1x64xf32>
    %29 = arith.mulf %28, %27 : vector<1x64xf32>
    %30 = math.tanh %29 : vector<1x64xf32>
    %cst_15 = arith.constant 5.000000e-01 : f32
    %31 = vector.broadcast %cst_15 : f32 to vector<1x64xf32>
    %32 = arith.mulf %31, %30 : vector<1x64xf32>
    %cst_16 = arith.constant 5.000000e-01 : f32
    %33 = vector.broadcast %cst_16 : f32 to vector<1x64xf32>
    %34 = arith.addf %32, %33 : vector<1x64xf32>
    %35 = arith.mulf %24, %4 : vector<1x64xf32>
    %36 = arith.mulf %16, %26 : vector<1x64xf32>
    %37 = arith.addf %35, %36 : vector<1x64xf32>
    %38 = math.tanh %37 : vector<1x64xf32>
    %39 = arith.mulf %34, %38 : vector<1x64xf32>
    %c0_17 = arith.constant 0 : index
    %c0_18 = arith.constant 0 : index
    %40 = vector.load %arg3[%c0_17, %c0_18] : memref<64x16xf32, #tpu.memory_space<vmem>>, vector<64x16xf32>
    %cst_19 = arith.constant dense<0.000000e+00> : vector<1x16xf32>
    %41 = tpu.matmul %39, %40, %cst_19 {dimension_numbers = #tpu.dot_dimension_numbers<[1], [0], [0], [1], [0, 0, 1, 1], [], []>} : vector<1x64xf32>, vector<64x16xf32>, vector<1x16xf32> -> vector<1x16xf32>
    %42 = vector.extract_strided_slice %2 {offsets = [1, 0], sizes = [1, 512], strides = [1, 1]} : vector<8x512xf32> to vector<1x512xf32>
    %c0_20 = arith.constant 0 : index
    %c0_21 = arith.constant 0 : index
    %43 = vector.load %arg2[%c0_20, %c0_21] : memref<64x512xf32, #tpu.memory_space<vmem>>, vector<64x512xf32>
    %cst_22 = arith.constant dense<0.000000e+00> : vector<1x512xf32>
    %44 = tpu.matmul %39, %43, %cst_22 {dimension_numbers = #tpu.dot_dimension_numbers<[1], [0], [0], [1], [0, 0, 1, 1], [], []>} : vector<1x64xf32>, vector<64x512xf32>, vector<1x512xf32> -> vector<1x512xf32>
    %45 = arith.addf %42, %44 : vector<1x512xf32>
    %46 = vector.extract_strided_slice %45 {offsets = [0, 0], sizes = [1, 64], strides = [1, 1]} : vector<1x512xf32> to vector<1x64xf32>
    %cst_23 = arith.constant 5.000000e-01 : f32
    %47 = vector.broadcast %cst_23 : f32 to vector<1x64xf32>
    %48 = arith.mulf %47, %46 : vector<1x64xf32>
    %49 = math.tanh %48 : vector<1x64xf32>
    %cst_24 = arith.constant 5.000000e-01 : f32
    %50 = vector.broadcast %cst_24 : f32 to vector<1x64xf32>
    %51 = arith.mulf %50, %49 : vector<1x64xf32>
    %cst_25 = arith.constant 5.000000e-01 : f32
    %52 = vector.broadcast %cst_25 : f32 to vector<1x64xf32>
    %53 = arith.addf %51, %52 : vector<1x64xf32>
    %54 = vector.extract_strided_slice %45 {offsets = [0, 128], sizes = [1, 64], strides = [1, 1]} : vector<1x512xf32> to vector<1x64xf32>
    %cst_26 = arith.constant 5.000000e-01 : f32
    %55 = vector.broadcast %cst_26 : f32 to vector<1x64xf32>
    %56 = arith.mulf %55, %54 : vector<1x64xf32>
    %57 = math.tanh %56 : vector<1x64xf32>
    %cst_27 = arith.constant 5.000000e-01 : f32
    %58 = vector.broadcast %cst_27 : f32 to vector<1x64xf32>
    %59 = arith.mulf %58, %57 : vector<1x64xf32>
    %cst_28 = arith.constant 5.000000e-01 : f32
    %60 = vector.broadcast %cst_28 : f32 to vector<1x64xf32>
    %61 = arith.addf %59, %60 : vector<1x64xf32>
    %62 = vector.extract_strided_slice %45 {offsets = [0, 256], sizes = [1, 64], strides = [1, 1]} : vector<1x512xf32> to vector<1x64xf32>
    %63 = math.tanh %62 : vector<1x64xf32>
    %64 = vector.extract_strided_slice %45 {offsets = [0, 384], sizes = [1, 64], strides = [1, 1]} : vector<1x512xf32> to vector<1x64xf32>
    %cst_29 = arith.constant 5.000000e-01 : f32
    %65 = vector.broadcast %cst_29 : f32 to vector<1x64xf32>
    %66 = arith.mulf %65, %64 : vector<1x64xf32>
    %67 = math.tanh %66 : vector<1x64xf32>
    %cst_30 = arith.constant 5.000000e-01 : f32
    %68 = vector.broadcast %cst_30 : f32 to vector<1x64xf32>
    %69 = arith.mulf %68, %67 : vector<1x64xf32>
    %cst_31 = arith.constant 5.000000e-01 : f32
    %70 = vector.broadcast %cst_31 : f32 to vector<1x64xf32>
    %71 = arith.addf %69, %70 : vector<1x64xf32>
    %72 = arith.mulf %61, %37 : vector<1x64xf32>
    %73 = arith.mulf %53, %63 : vector<1x64xf32>
    %74 = arith.addf %72, %73 : vector<1x64xf32>
    %75 = math.tanh %74 : vector<1x64xf32>
    %76 = arith.mulf %71, %75 : vector<1x64xf32>
    %c0_32 = arith.constant 0 : index
    %c0_33 = arith.constant 0 : index
    %77 = vector.load %arg3[%c0_32, %c0_33] : memref<64x16xf32, #tpu.memory_space<vmem>>, vector<64x16xf32>
    %cst_34 = arith.constant dense<0.000000e+00> : vector<1x16xf32>
    %78 = tpu.matmul %76, %77, %cst_34 {dimension_numbers = #tpu.dot_dimension_numbers<[1], [0], [0], [1], [0, 0, 1, 1], [], []>} : vector<1x64xf32>, vector<64x16xf32>, vector<1x16xf32> -> vector<1x16xf32>
    %79 = vector.extract_strided_slice %2 {offsets = [2, 0], sizes = [1, 512], strides = [1, 1]} : vector<8x512xf32> to vector<1x512xf32>
    %c0_35 = arith.constant 0 : index
    %c0_36 = arith.constant 0 : index
    %80 = vector.load %arg2[%c0_35, %c0_36] : memref<64x512xf32, #tpu.memory_space<vmem>>, vector<64x512xf32>
    %cst_37 = arith.constant dense<0.000000e+00> : vector<1x512xf32>
    %81 = tpu.matmul %76, %80, %cst_37 {dimension_numbers = #tpu.dot_dimension_numbers<[1], [0], [0], [1], [0, 0, 1, 1], [], []>} : vector<1x64xf32>, vector<64x512xf32>, vector<1x512xf32> -> vector<1x512xf32>
    %82 = arith.addf %79, %81 : vector<1x512xf32>
    %83 = vector.extract_strided_slice %82 {offsets = [0, 0], sizes = [1, 64], strides = [1, 1]} : vector<1x512xf32> to vector<1x64xf32>
    %cst_38 = arith.constant 5.000000e-01 : f32
    %84 = vector.broadcast %cst_38 : f32 to vector<1x64xf32>
    %85 = arith.mulf %84, %83 : vector<1x64xf32>
    %86 = math.tanh %85 : vector<1x64xf32>
    %cst_39 = arith.constant 5.000000e-01 : f32
    %87 = vector.broadcast %cst_39 : f32 to vector<1x64xf32>
    %88 = arith.mulf %87, %86 : vector<1x64xf32>
    %cst_40 = arith.constant 5.000000e-01 : f32
    %89 = vector.broadcast %cst_40 : f32 to vector<1x64xf32>
    %90 = arith.addf %88, %89 : vector<1x64xf32>
    %91 = vector.extract_strided_slice %82 {offsets = [0, 128], sizes = [1, 64], strides = [1, 1]} : vector<1x512xf32> to vector<1x64xf32>
    %cst_41 = arith.constant 5.000000e-01 : f32
    %92 = vector.broadcast %cst_41 : f32 to vector<1x64xf32>
    %93 = arith.mulf %92, %91 : vector<1x64xf32>
    %94 = math.tanh %93 : vector<1x64xf32>
    %cst_42 = arith.constant 5.000000e-01 : f32
    %95 = vector.broadcast %cst_42 : f32 to vector<1x64xf32>
    %96 = arith.mulf %95, %94 : vector<1x64xf32>
    %cst_43 = arith.constant 5.000000e-01 : f32
    %97 = vector.broadcast %cst_43 : f32 to vector<1x64xf32>
    %98 = arith.addf %96, %97 : vector<1x64xf32>
    %99 = vector.extract_strided_slice %82 {offsets = [0, 256], sizes = [1, 64], strides = [1, 1]} : vector<1x512xf32> to vector<1x64xf32>
    %100 = math.tanh %99 : vector<1x64xf32>
    %101 = vector.extract_strided_slice %82 {offsets = [0, 384], sizes = [1, 64], strides = [1, 1]} : vector<1x512xf32> to vector<1x64xf32>
    %cst_44 = arith.constant 5.000000e-01 : f32
    %102 = vector.broadcast %cst_44 : f32 to vector<1x64xf32>
    %103 = arith.mulf %102, %101 : vector<1x64xf32>
    %104 = math.tanh %103 : vector<1x64xf32>
    %cst_45 = arith.constant 5.000000e-01 : f32
    %105 = vector.broadcast %cst_45 : f32 to vector<1x64xf32>
    %106 = arith.mulf %105, %104 : vector<1x64xf32>
    %cst_46 = arith.constant 5.000000e-01 : f32
    %107 = vector.broadcast %cst_46 : f32 to vector<1x64xf32>
    %108 = arith.addf %106, %107 : vector<1x64xf32>
    %109 = arith.mulf %98, %74 : vector<1x64xf32>
    %110 = arith.mulf %90, %100 : vector<1x64xf32>
    %111 = arith.addf %109, %110 : vector<1x64xf32>
    %112 = math.tanh %111 : vector<1x64xf32>
    %113 = arith.mulf %108, %112 : vector<1x64xf32>
    %c0_47 = arith.constant 0 : index
    %c0_48 = arith.constant 0 : index
    %114 = vector.load %arg3[%c0_47, %c0_48] : memref<64x16xf32, #tpu.memory_space<vmem>>, vector<64x16xf32>
    %cst_49 = arith.constant dense<0.000000e+00> : vector<1x16xf32>
    %115 = tpu.matmul %113, %114, %cst_49 {dimension_numbers = #tpu.dot_dimension_numbers<[1], [0], [0], [1], [0, 0, 1, 1], [], []>} : vector<1x64xf32>, vector<64x16xf32>, vector<1x16xf32> -> vector<1x16xf32>
    %116 = vector.extract_strided_slice %2 {offsets = [3, 0], sizes = [1, 512], strides = [1, 1]} : vector<8x512xf32> to vector<1x512xf32>
    %c0_50 = arith.constant 0 : index
    %c0_51 = arith.constant 0 : index
    %117 = vector.load %arg2[%c0_50, %c0_51] : memref<64x512xf32, #tpu.memory_space<vmem>>, vector<64x512xf32>
    %cst_52 = arith.constant dense<0.000000e+00> : vector<1x512xf32>
    %118 = tpu.matmul %113, %117, %cst_52 {dimension_numbers = #tpu.dot_dimension_numbers<[1], [0], [0], [1], [0, 0, 1, 1], [], []>} : vector<1x64xf32>, vector<64x512xf32>, vector<1x512xf32> -> vector<1x512xf32>
    %119 = arith.addf %116, %118 : vector<1x512xf32>
    %120 = vector.extract_strided_slice %119 {offsets = [0, 0], sizes = [1, 64], strides = [1, 1]} : vector<1x512xf32> to vector<1x64xf32>
    %cst_53 = arith.constant 5.000000e-01 : f32
    %121 = vector.broadcast %cst_53 : f32 to vector<1x64xf32>
    %122 = arith.mulf %121, %120 : vector<1x64xf32>
    %123 = math.tanh %122 : vector<1x64xf32>
    %cst_54 = arith.constant 5.000000e-01 : f32
    %124 = vector.broadcast %cst_54 : f32 to vector<1x64xf32>
    %125 = arith.mulf %124, %123 : vector<1x64xf32>
    %cst_55 = arith.constant 5.000000e-01 : f32
    %126 = vector.broadcast %cst_55 : f32 to vector<1x64xf32>
    %127 = arith.addf %125, %126 : vector<1x64xf32>
    %128 = vector.extract_strided_slice %119 {offsets = [0, 128], sizes = [1, 64], strides = [1, 1]} : vector<1x512xf32> to vector<1x64xf32>
    %cst_56 = arith.constant 5.000000e-01 : f32
    %129 = vector.broadcast %cst_56 : f32 to vector<1x64xf32>
    %130 = arith.mulf %129, %128 : vector<1x64xf32>
    %131 = math.tanh %130 : vector<1x64xf32>
    %cst_57 = arith.constant 5.000000e-01 : f32
    %132 = vector.broadcast %cst_57 : f32 to vector<1x64xf32>
    %133 = arith.mulf %132, %131 : vector<1x64xf32>
    %cst_58 = arith.constant 5.000000e-01 : f32
    %134 = vector.broadcast %cst_58 : f32 to vector<1x64xf32>
    %135 = arith.addf %133, %134 : vector<1x64xf32>
    %136 = vector.extract_strided_slice %119 {offsets = [0, 256], sizes = [1, 64], strides = [1, 1]} : vector<1x512xf32> to vector<1x64xf32>
    %137 = math.tanh %136 : vector<1x64xf32>
    %138 = vector.extract_strided_slice %119 {offsets = [0, 384], sizes = [1, 64], strides = [1, 1]} : vector<1x512xf32> to vector<1x64xf32>
    %cst_59 = arith.constant 5.000000e-01 : f32
    %139 = vector.broadcast %cst_59 : f32 to vector<1x64xf32>
    %140 = arith.mulf %139, %138 : vector<1x64xf32>
    %141 = math.tanh %140 : vector<1x64xf32>
    %cst_60 = arith.constant 5.000000e-01 : f32
    %142 = vector.broadcast %cst_60 : f32 to vector<1x64xf32>
    %143 = arith.mulf %142, %141 : vector<1x64xf32>
    %cst_61 = arith.constant 5.000000e-01 : f32
    %144 = vector.broadcast %cst_61 : f32 to vector<1x64xf32>
    %145 = arith.addf %143, %144 : vector<1x64xf32>
    %146 = arith.mulf %135, %111 : vector<1x64xf32>
    %147 = arith.mulf %127, %137 : vector<1x64xf32>
    %148 = arith.addf %146, %147 : vector<1x64xf32>
    %149 = math.tanh %148 : vector<1x64xf32>
    %150 = arith.mulf %145, %149 : vector<1x64xf32>
    %c0_62 = arith.constant 0 : index
    %c0_63 = arith.constant 0 : index
    %151 = vector.load %arg3[%c0_62, %c0_63] : memref<64x16xf32, #tpu.memory_space<vmem>>, vector<64x16xf32>
    %cst_64 = arith.constant dense<0.000000e+00> : vector<1x16xf32>
    %152 = tpu.matmul %150, %151, %cst_64 {dimension_numbers = #tpu.dot_dimension_numbers<[1], [0], [0], [1], [0, 0, 1, 1], [], []>} : vector<1x64xf32>, vector<64x16xf32>, vector<1x16xf32> -> vector<1x16xf32>
    %153 = vector.extract_strided_slice %2 {offsets = [4, 0], sizes = [1, 512], strides = [1, 1]} : vector<8x512xf32> to vector<1x512xf32>
    %c0_65 = arith.constant 0 : index
    %c0_66 = arith.constant 0 : index
    %154 = vector.load %arg2[%c0_65, %c0_66] : memref<64x512xf32, #tpu.memory_space<vmem>>, vector<64x512xf32>
    %cst_67 = arith.constant dense<0.000000e+00> : vector<1x512xf32>
    %155 = tpu.matmul %150, %154, %cst_67 {dimension_numbers = #tpu.dot_dimension_numbers<[1], [0], [0], [1], [0, 0, 1, 1], [], []>} : vector<1x64xf32>, vector<64x512xf32>, vector<1x512xf32> -> vector<1x512xf32>
    %156 = arith.addf %153, %155 : vector<1x512xf32>
    %157 = vector.extract_strided_slice %156 {offsets = [0, 0], sizes = [1, 64], strides = [1, 1]} : vector<1x512xf32> to vector<1x64xf32>
    %cst_68 = arith.constant 5.000000e-01 : f32
    %158 = vector.broadcast %cst_68 : f32 to vector<1x64xf32>
    %159 = arith.mulf %158, %157 : vector<1x64xf32>
    %160 = math.tanh %159 : vector<1x64xf32>
    %cst_69 = arith.constant 5.000000e-01 : f32
    %161 = vector.broadcast %cst_69 : f32 to vector<1x64xf32>
    %162 = arith.mulf %161, %160 : vector<1x64xf32>
    %cst_70 = arith.constant 5.000000e-01 : f32
    %163 = vector.broadcast %cst_70 : f32 to vector<1x64xf32>
    %164 = arith.addf %162, %163 : vector<1x64xf32>
    %165 = vector.extract_strided_slice %156 {offsets = [0, 128], sizes = [1, 64], strides = [1, 1]} : vector<1x512xf32> to vector<1x64xf32>
    %cst_71 = arith.constant 5.000000e-01 : f32
    %166 = vector.broadcast %cst_71 : f32 to vector<1x64xf32>
    %167 = arith.mulf %166, %165 : vector<1x64xf32>
    %168 = math.tanh %167 : vector<1x64xf32>
    %cst_72 = arith.constant 5.000000e-01 : f32
    %169 = vector.broadcast %cst_72 : f32 to vector<1x64xf32>
    %170 = arith.mulf %169, %168 : vector<1x64xf32>
    %cst_73 = arith.constant 5.000000e-01 : f32
    %171 = vector.broadcast %cst_73 : f32 to vector<1x64xf32>
    %172 = arith.addf %170, %171 : vector<1x64xf32>
    %173 = vector.extract_strided_slice %156 {offsets = [0, 256], sizes = [1, 64], strides = [1, 1]} : vector<1x512xf32> to vector<1x64xf32>
    %174 = math.tanh %173 : vector<1x64xf32>
    %175 = vector.extract_strided_slice %156 {offsets = [0, 384], sizes = [1, 64], strides = [1, 1]} : vector<1x512xf32> to vector<1x64xf32>
    %cst_74 = arith.constant 5.000000e-01 : f32
    %176 = vector.broadcast %cst_74 : f32 to vector<1x64xf32>
    %177 = arith.mulf %176, %175 : vector<1x64xf32>
    %178 = math.tanh %177 : vector<1x64xf32>
    %cst_75 = arith.constant 5.000000e-01 : f32
    %179 = vector.broadcast %cst_75 : f32 to vector<1x64xf32>
    %180 = arith.mulf %179, %178 : vector<1x64xf32>
    %cst_76 = arith.constant 5.000000e-01 : f32
    %181 = vector.broadcast %cst_76 : f32 to vector<1x64xf32>
    %182 = arith.addf %180, %181 : vector<1x64xf32>
    %183 = arith.mulf %172, %148 : vector<1x64xf32>
    %184 = arith.mulf %164, %174 : vector<1x64xf32>
    %185 = arith.addf %183, %184 : vector<1x64xf32>
    %186 = math.tanh %185 : vector<1x64xf32>
    %187 = arith.mulf %182, %186 : vector<1x64xf32>
    %c0_77 = arith.constant 0 : index
    %c0_78 = arith.constant 0 : index
    %188 = vector.load %arg3[%c0_77, %c0_78] : memref<64x16xf32, #tpu.memory_space<vmem>>, vector<64x16xf32>
    %cst_79 = arith.constant dense<0.000000e+00> : vector<1x16xf32>
    %189 = tpu.matmul %187, %188, %cst_79 {dimension_numbers = #tpu.dot_dimension_numbers<[1], [0], [0], [1], [0, 0, 1, 1], [], []>} : vector<1x64xf32>, vector<64x16xf32>, vector<1x16xf32> -> vector<1x16xf32>
    %190 = vector.extract_strided_slice %2 {offsets = [5, 0], sizes = [1, 512], strides = [1, 1]} : vector<8x512xf32> to vector<1x512xf32>
    %c0_80 = arith.constant 0 : index
    %c0_81 = arith.constant 0 : index
    %191 = vector.load %arg2[%c0_80, %c0_81] : memref<64x512xf32, #tpu.memory_space<vmem>>, vector<64x512xf32>
    %cst_82 = arith.constant dense<0.000000e+00> : vector<1x512xf32>
    %192 = tpu.matmul %187, %191, %cst_82 {dimension_numbers = #tpu.dot_dimension_numbers<[1], [0], [0], [1], [0, 0, 1, 1], [], []>} : vector<1x64xf32>, vector<64x512xf32>, vector<1x512xf32> -> vector<1x512xf32>
    %193 = arith.addf %190, %192 : vector<1x512xf32>
    %194 = vector.extract_strided_slice %193 {offsets = [0, 0], sizes = [1, 64], strides = [1, 1]} : vector<1x512xf32> to vector<1x64xf32>
    %cst_83 = arith.constant 5.000000e-01 : f32
    %195 = vector.broadcast %cst_83 : f32 to vector<1x64xf32>
    %196 = arith.mulf %195, %194 : vector<1x64xf32>
    %197 = math.tanh %196 : vector<1x64xf32>
    %cst_84 = arith.constant 5.000000e-01 : f32
    %198 = vector.broadcast %cst_84 : f32 to vector<1x64xf32>
    %199 = arith.mulf %198, %197 : vector<1x64xf32>
    %cst_85 = arith.constant 5.000000e-01 : f32
    %200 = vector.broadcast %cst_85 : f32 to vector<1x64xf32>
    %201 = arith.addf %199, %200 : vector<1x64xf32>
    %202 = vector.extract_strided_slice %193 {offsets = [0, 128], sizes = [1, 64], strides = [1, 1]} : vector<1x512xf32> to vector<1x64xf32>
    %cst_86 = arith.constant 5.000000e-01 : f32
    %203 = vector.broadcast %cst_86 : f32 to vector<1x64xf32>
    %204 = arith.mulf %203, %202 : vector<1x64xf32>
    %205 = math.tanh %204 : vector<1x64xf32>
    %cst_87 = arith.constant 5.000000e-01 : f32
    %206 = vector.broadcast %cst_87 : f32 to vector<1x64xf32>
    %207 = arith.mulf %206, %205 : vector<1x64xf32>
    %cst_88 = arith.constant 5.000000e-01 : f32
    %208 = vector.broadcast %cst_88 : f32 to vector<1x64xf32>
    %209 = arith.addf %207, %208 : vector<1x64xf32>
    %210 = vector.extract_strided_slice %193 {offsets = [0, 256], sizes = [1, 64], strides = [1, 1]} : vector<1x512xf32> to vector<1x64xf32>
    %211 = math.tanh %210 : vector<1x64xf32>
    %212 = vector.extract_strided_slice %193 {offsets = [0, 384], sizes = [1, 64], strides = [1, 1]} : vector<1x512xf32> to vector<1x64xf32>
    %cst_89 = arith.constant 5.000000e-01 : f32
    %213 = vector.broadcast %cst_89 : f32 to vector<1x64xf32>
    %214 = arith.mulf %213, %212 : vector<1x64xf32>
    %215 = math.tanh %214 : vector<1x64xf32>
    %cst_90 = arith.constant 5.000000e-01 : f32
    %216 = vector.broadcast %cst_90 : f32 to vector<1x64xf32>
    %217 = arith.mulf %216, %215 : vector<1x64xf32>
    %cst_91 = arith.constant 5.000000e-01 : f32
    %218 = vector.broadcast %cst_91 : f32 to vector<1x64xf32>
    %219 = arith.addf %217, %218 : vector<1x64xf32>
    %220 = arith.mulf %209, %185 : vector<1x64xf32>
    %221 = arith.mulf %201, %211 : vector<1x64xf32>
    %222 = arith.addf %220, %221 : vector<1x64xf32>
    %223 = math.tanh %222 : vector<1x64xf32>
    %224 = arith.mulf %219, %223 : vector<1x64xf32>
    %c0_92 = arith.constant 0 : index
    %c0_93 = arith.constant 0 : index
    %225 = vector.load %arg3[%c0_92, %c0_93] : memref<64x16xf32, #tpu.memory_space<vmem>>, vector<64x16xf32>
    %cst_94 = arith.constant dense<0.000000e+00> : vector<1x16xf32>
    %226 = tpu.matmul %224, %225, %cst_94 {dimension_numbers = #tpu.dot_dimension_numbers<[1], [0], [0], [1], [0, 0, 1, 1], [], []>} : vector<1x64xf32>, vector<64x16xf32>, vector<1x16xf32> -> vector<1x16xf32>
    %227 = vector.extract_strided_slice %2 {offsets = [6, 0], sizes = [1, 512], strides = [1, 1]} : vector<8x512xf32> to vector<1x512xf32>
    %c0_95 = arith.constant 0 : index
    %c0_96 = arith.constant 0 : index
    %228 = vector.load %arg2[%c0_95, %c0_96] : memref<64x512xf32, #tpu.memory_space<vmem>>, vector<64x512xf32>
    %cst_97 = arith.constant dense<0.000000e+00> : vector<1x512xf32>
    %229 = tpu.matmul %224, %228, %cst_97 {dimension_numbers = #tpu.dot_dimension_numbers<[1], [0], [0], [1], [0, 0, 1, 1], [], []>} : vector<1x64xf32>, vector<64x512xf32>, vector<1x512xf32> -> vector<1x512xf32>
    %230 = arith.addf %227, %229 : vector<1x512xf32>
    %231 = vector.extract_strided_slice %230 {offsets = [0, 0], sizes = [1, 64], strides = [1, 1]} : vector<1x512xf32> to vector<1x64xf32>
    %cst_98 = arith.constant 5.000000e-01 : f32
    %232 = vector.broadcast %cst_98 : f32 to vector<1x64xf32>
    %233 = arith.mulf %232, %231 : vector<1x64xf32>
    %234 = math.tanh %233 : vector<1x64xf32>
    %cst_99 = arith.constant 5.000000e-01 : f32
    %235 = vector.broadcast %cst_99 : f32 to vector<1x64xf32>
    %236 = arith.mulf %235, %234 : vector<1x64xf32>
    %cst_100 = arith.constant 5.000000e-01 : f32
    %237 = vector.broadcast %cst_100 : f32 to vector<1x64xf32>
    %238 = arith.addf %236, %237 : vector<1x64xf32>
    %239 = vector.extract_strided_slice %230 {offsets = [0, 128], sizes = [1, 64], strides = [1, 1]} : vector<1x512xf32> to vector<1x64xf32>
    %cst_101 = arith.constant 5.000000e-01 : f32
    %240 = vector.broadcast %cst_101 : f32 to vector<1x64xf32>
    %241 = arith.mulf %240, %239 : vector<1x64xf32>
    %242 = math.tanh %241 : vector<1x64xf32>
    %cst_102 = arith.constant 5.000000e-01 : f32
    %243 = vector.broadcast %cst_102 : f32 to vector<1x64xf32>
    %244 = arith.mulf %243, %242 : vector<1x64xf32>
    %cst_103 = arith.constant 5.000000e-01 : f32
    %245 = vector.broadcast %cst_103 : f32 to vector<1x64xf32>
    %246 = arith.addf %244, %245 : vector<1x64xf32>
    %247 = vector.extract_strided_slice %230 {offsets = [0, 256], sizes = [1, 64], strides = [1, 1]} : vector<1x512xf32> to vector<1x64xf32>
    %248 = math.tanh %247 : vector<1x64xf32>
    %249 = vector.extract_strided_slice %230 {offsets = [0, 384], sizes = [1, 64], strides = [1, 1]} : vector<1x512xf32> to vector<1x64xf32>
    %cst_104 = arith.constant 5.000000e-01 : f32
    %250 = vector.broadcast %cst_104 : f32 to vector<1x64xf32>
    %251 = arith.mulf %250, %249 : vector<1x64xf32>
    %252 = math.tanh %251 : vector<1x64xf32>
    %cst_105 = arith.constant 5.000000e-01 : f32
    %253 = vector.broadcast %cst_105 : f32 to vector<1x64xf32>
    %254 = arith.mulf %253, %252 : vector<1x64xf32>
    %cst_106 = arith.constant 5.000000e-01 : f32
    %255 = vector.broadcast %cst_106 : f32 to vector<1x64xf32>
    %256 = arith.addf %254, %255 : vector<1x64xf32>
    %257 = arith.mulf %246, %222 : vector<1x64xf32>
    %258 = arith.mulf %238, %248 : vector<1x64xf32>
    %259 = arith.addf %257, %258 : vector<1x64xf32>
    %260 = math.tanh %259 : vector<1x64xf32>
    %261 = arith.mulf %256, %260 : vector<1x64xf32>
    %c0_107 = arith.constant 0 : index
    %c0_108 = arith.constant 0 : index
    %262 = vector.load %arg3[%c0_107, %c0_108] : memref<64x16xf32, #tpu.memory_space<vmem>>, vector<64x16xf32>
    %cst_109 = arith.constant dense<0.000000e+00> : vector<1x16xf32>
    %263 = tpu.matmul %261, %262, %cst_109 {dimension_numbers = #tpu.dot_dimension_numbers<[1], [0], [0], [1], [0, 0, 1, 1], [], []>} : vector<1x64xf32>, vector<64x16xf32>, vector<1x16xf32> -> vector<1x16xf32>
    %264 = vector.extract_strided_slice %2 {offsets = [7, 0], sizes = [1, 512], strides = [1, 1]} : vector<8x512xf32> to vector<1x512xf32>
    %c0_110 = arith.constant 0 : index
    %c0_111 = arith.constant 0 : index
    %265 = vector.load %arg2[%c0_110, %c0_111] : memref<64x512xf32, #tpu.memory_space<vmem>>, vector<64x512xf32>
    %cst_112 = arith.constant dense<0.000000e+00> : vector<1x512xf32>
    %266 = tpu.matmul %261, %265, %cst_112 {dimension_numbers = #tpu.dot_dimension_numbers<[1], [0], [0], [1], [0, 0, 1, 1], [], []>} : vector<1x64xf32>, vector<64x512xf32>, vector<1x512xf32> -> vector<1x512xf32>
    %267 = arith.addf %264, %266 : vector<1x512xf32>
    %268 = vector.extract_strided_slice %267 {offsets = [0, 0], sizes = [1, 64], strides = [1, 1]} : vector<1x512xf32> to vector<1x64xf32>
    %cst_113 = arith.constant 5.000000e-01 : f32
    %269 = vector.broadcast %cst_113 : f32 to vector<1x64xf32>
    %270 = arith.mulf %269, %268 : vector<1x64xf32>
    %271 = math.tanh %270 : vector<1x64xf32>
    %cst_114 = arith.constant 5.000000e-01 : f32
    %272 = vector.broadcast %cst_114 : f32 to vector<1x64xf32>
    %273 = arith.mulf %272, %271 : vector<1x64xf32>
    %cst_115 = arith.constant 5.000000e-01 : f32
    %274 = vector.broadcast %cst_115 : f32 to vector<1x64xf32>
    %275 = arith.addf %273, %274 : vector<1x64xf32>
    %276 = vector.extract_strided_slice %267 {offsets = [0, 128], sizes = [1, 64], strides = [1, 1]} : vector<1x512xf32> to vector<1x64xf32>
    %cst_116 = arith.constant 5.000000e-01 : f32
    %277 = vector.broadcast %cst_116 : f32 to vector<1x64xf32>
    %278 = arith.mulf %277, %276 : vector<1x64xf32>
    %279 = math.tanh %278 : vector<1x64xf32>
    %cst_117 = arith.constant 5.000000e-01 : f32
    %280 = vector.broadcast %cst_117 : f32 to vector<1x64xf32>
    %281 = arith.mulf %280, %279 : vector<1x64xf32>
    %cst_118 = arith.constant 5.000000e-01 : f32
    %282 = vector.broadcast %cst_118 : f32 to vector<1x64xf32>
    %283 = arith.addf %281, %282 : vector<1x64xf32>
    %284 = vector.extract_strided_slice %267 {offsets = [0, 256], sizes = [1, 64], strides = [1, 1]} : vector<1x512xf32> to vector<1x64xf32>
    %285 = math.tanh %284 : vector<1x64xf32>
    %286 = vector.extract_strided_slice %267 {offsets = [0, 384], sizes = [1, 64], strides = [1, 1]} : vector<1x512xf32> to vector<1x64xf32>
    %cst_119 = arith.constant 5.000000e-01 : f32
    %287 = vector.broadcast %cst_119 : f32 to vector<1x64xf32>
    %288 = arith.mulf %287, %286 : vector<1x64xf32>
    %289 = math.tanh %288 : vector<1x64xf32>
    %cst_120 = arith.constant 5.000000e-01 : f32
    %290 = vector.broadcast %cst_120 : f32 to vector<1x64xf32>
    %291 = arith.mulf %290, %289 : vector<1x64xf32>
    %cst_121 = arith.constant 5.000000e-01 : f32
    %292 = vector.broadcast %cst_121 : f32 to vector<1x64xf32>
    %293 = arith.addf %291, %292 : vector<1x64xf32>
    %294 = arith.mulf %283, %259 : vector<1x64xf32>
    %295 = arith.mulf %275, %285 : vector<1x64xf32>
    %296 = arith.addf %294, %295 : vector<1x64xf32>
    %297 = math.tanh %296 : vector<1x64xf32>
    %298 = arith.mulf %293, %297 : vector<1x64xf32>
    %c0_122 = arith.constant 0 : index
    %c0_123 = arith.constant 0 : index
    %299 = vector.load %arg3[%c0_122, %c0_123] : memref<64x16xf32, #tpu.memory_space<vmem>>, vector<64x16xf32>
    %cst_124 = arith.constant dense<0.000000e+00> : vector<1x16xf32>
    %300 = tpu.matmul %298, %299, %cst_124 {dimension_numbers = #tpu.dot_dimension_numbers<[1], [0], [0], [1], [0, 0, 1, 1], [], []>} : vector<1x64xf32>, vector<64x16xf32>, vector<1x16xf32> -> vector<1x16xf32>
    %301 = tpu.concatenate %41, %78, %115, %152, %189, %226, %263, %300 in 0 : vector<1x16xf32>, vector<1x16xf32>, vector<1x16xf32>, vector<1x16xf32>, vector<1x16xf32>, vector<1x16xf32>, vector<1x16xf32>, vector<1x16xf32> -> vector<8x16xf32>
    %c0_125 = arith.constant 0 : index
    %c0_126 = arith.constant 0 : index
    %302 = vector.load %arg4[%c0_125, %c0_126] : memref<3x16xf32, #tpu.memory_space<vmem>>, vector<1x16xf32>
    %c1 = arith.constant 1 : index
    %c0_127 = arith.constant 0 : index
    %303 = vector.load %arg4[%c1, %c0_127] : memref<3x16xf32, #tpu.memory_space<vmem>>, vector<1x16xf32>
    %c2 = arith.constant 2 : index
    %c0_128 = arith.constant 0 : index
    %304 = vector.load %arg4[%c2, %c0_128] : memref<3x16xf32, #tpu.memory_space<vmem>>, vector<1x1xf32>
    %305 = vector.broadcast %302 : vector<1x16xf32> to vector<8x16xf32>
    %306 = arith.addf %301, %305 : vector<8x16xf32>
    %cst_129 = arith.constant 0.000000e+00 : f32
    %307 = vector.broadcast %cst_129 : f32 to vector<8x16xf32>
    %308 = arith.maximumf %306, %307 : vector<8x16xf32>
    %309 = vector.broadcast %303 : vector<1x16xf32> to vector<8x16xf32>
    %310 = arith.mulf %308, %309 : vector<8x16xf32>
    %cst_130 = arith.constant dense<0.000000e+00> : vector<8xf32>
    %311 = vector.multi_reduction <add>, %310, %cst_130 [1] : vector<8x16xf32> to vector<8xf32>
    %312 = vector.shape_cast %311 : vector<8xf32> to vector<8x1xf32>
    %313 = vector.broadcast %304 : vector<1x1xf32> to vector<8x1xf32>
    %314 = arith.addf %312, %313 : vector<8x1xf32>
    %cst_131 = arith.constant 5.000000e-01 : f32
    %315 = vector.broadcast %cst_131 : f32 to vector<8x1xf32>
    %316 = arith.mulf %315, %314 : vector<8x1xf32>
    %317 = math.tanh %316 : vector<8x1xf32>
    %cst_132 = arith.constant 5.000000e-01 : f32
    %318 = vector.broadcast %cst_132 : f32 to vector<8x1xf32>
    %319 = arith.mulf %318, %317 : vector<8x1xf32>
    %cst_133 = arith.constant 5.000000e-01 : f32
    %320 = vector.broadcast %cst_133 : f32 to vector<8x1xf32>
    %321 = arith.addf %319, %320 : vector<8x1xf32>
    %c0_134 = arith.constant 0 : index
    %c0_135 = arith.constant 0 : index
    %322 = vector.load %arg5[%c0_134, %c0_135] : memref<8x1xf32, #tpu.memory_space<vmem>>, vector<8x1xf32>
    tpu.vector_store %arg5[%c0_134, %c0_135], %321 {strides = array<i32>} : memref<8x1xf32, #tpu.memory_space<vmem>>, vector<8x1xf32>,
    return
  }
}

</mosaic_0001>

<bundles_post_ra>
// kernel: rnn_classifier_lstm.1
= control target key start
LH: loop header
LB: loop body
LE: loop exit
PB: predicated region body
PF: predicated region fallthrough
CT: control target
= control target key end

     0   :  { %v3011_v3 = vmov 0.0   ;;  %vm37_vm0 = vcmask 1040384   ;;  %vm33_vm1 = vcmask 138240   ;;  %vm3013_vm2 = vmmov 0   ;;  %s3591_s1 = inlined_call_operand.vmem [shape: f32[17,512], index: 1, kind: input, shape index: {}]   ;;  %s3592_s0 = inlined_call_operand.vmem [shape: f32[8,17], index: 0, kind: input, shape index: {}]   ;;  %s3593_s2 = inlined_call_operand.vmem [shape: f32[64,512], index: 2, kind: input, shape index: {}]   ;;  %s3594_s3 = inlined_call_operand.vmem [shape: f32[64,16], index: 3, kind: input, shape index: {}]   ;;  %s3595_s4 = inlined_call_operand.vmem [shape: f32[3,16], index: 4, kind: input, shape index: {}]   ;;  %s3596_s5 = inlined_call_operand.vmem [shape: f32[8,1], index: 5, kind: output, shape index: {}]  }
   0x1   :  { %v22_v0 = vld [vmem:[%s3591_s1 + $0x8] sm:$0xff]  ;;  %v24_v2 = vld [vmem:[%s3591_s1 + $0x18] sm:$0xff]  ;;  %114 = vmatprep.mubr.f32.mxu0 %v3011_v3  ;;  %185 = vmatprep.mubr.f32.mxu1 %v3011_v3  ;;  %v21_v6 = vld [vmem:[%s3591_s1] sm:$0xff]  ;;  %vm224_vm3 = vcmask 523264   ;;  %vm2266_vm4 = vcmask 1041408   ;;  %vm2268_vm5 = vcmask 1042432  }
   0x2   :  { %v26_v1 = vld [vmem:[%s3591_s1 + $0x28] sm:$0xff]  ;;  %v28_v5 = vld [vmem:[%s3591_s1 + $0x38] sm:$0xff]  ;;  %v25_v7 = vld [vmem:[%s3591_s1 + $0x20] sm:$0xff]  ;;  %vm2270_vm6 = vcmask 1043456   ;;  %vm2272_vm7 = vcmask 1044480   ;;  %vm2274_vm8 = vcmask 1045504  }
   0x3   :  { %v2566_v4 = vpack.c.bf16 %v26_v1, %v22_v0  ;;  %v2570_v8 = vpack.c.bf16 %v28_v5, %v24_v2  ;;  %v2568_v9 = vpack.c.bf16 %v25_v7, %v21_v6  ;;  %v23_v10 = vld [vmem:[%s3591_s1 + $0x10] sm:$0xff]  ;;  %v30_v12 = vld [vmem:[%s3591_s1 + $0x48] sm:$0x1]  ;;  %v32_v14 = vld [vmem:[%s3591_s1 + $0x58] sm:$0x1]  ;;  %v3012_v6 = vmov 0.0|0.0  }
   0x4   :  { %v27_v11 = vld [vmem:[%s3591_s1 + $0x30] sm:$0xff]  ;;  %v29_v15 = vld [vmem:[%s3591_s1 + $0x40] sm:$0x1]  ;;  %v193_v18 = vld [vmem:[%s3593_s2 + $0x8] sm:$0xff]  ;;  %vm2276_vm9 = vcmask 1046528   ;;  %vm2292_vm10 = vcmask 130048  }
   0x5   :  { %2567 = vmatprep.subr.bf16.mxu0 %v2566_v4  ;;  %v2572_v13 = vpack.c.bf16 %v27_v11, %v23_v10  ;;  %2571 = vmatprep.subr.bf16.mxu1 %v2570_v8  ;;  %v31_v16 = vld [vmem:[%s3591_s1 + $0x50] sm:$0x1]  ;;  %v20_v17 = vld [vmem:[%s3592_s0] sm:$0xff]  ;;  %v197_v19 = vld [vmem:[%s3593_s2 + $0x28] sm:$0xff]  ;;  %vm2305_vm11 = vcmask 7168  }
   0x6   :  { %2569 = vmatpush1.bf16.msra.mxu0 %v2568_v9  ;;  %v195_v20 = vld [vmem:[%s3593_s2 + $0x18] sm:$0xff]  ;;  %v192_v22 = vld [vmem:[%s3593_s2] sm:$0xff]  ;;  %v3102_v23 = vpack.c.bf16 %v197_v19, %v193_v18  ;;  %v194_v26 = vld [vmem:[%s3593_s2 + $0x10] sm:$0xff] }
   0x7   :  { %2573 = vmatpush1.bf16.msra.mxu1 %v2572_v13  ;;  %2311 = vmatprep.subr.msk.mxu0 %vm37_vm0, %v30_v12  ;;  %v199_v21 = vld [vmem:[%s3593_s2 + $0x38] sm:$0xff]  ;;  %v196_v25 = vld [vmem:[%s3593_s2 + $0x20] sm:$0xff]  ;;  %v198_v27 = vld [vmem:[%s3593_s2 + $0x30] sm:$0xff] }
   0x8   :  { %2314 = vmatprep.subr.msk.mxu1 %vm37_vm0, %v32_v14  ;;  %v3104_v24 = vpack.c.bf16 %v199_v21, %v195_v20  ;;  %v3115_v28 = vpack.c.bf16 %v196_v25, %v192_v22  ;;  %v201_v29 = vld [vmem:[%s3593_s2 + $0x48] sm:$0xff]  ;;  %v203_v31 = vld [vmem:[%s3593_s2 + $0x58] sm:$0xff]  ;;  %v3127_v32 = vpack.c.bf16 %v198_v27, %v194_v26  ;;  %v200_v35 = vld [vmem:[%s3593_s2 + $0x40] sm:$0xff] }
   0x9   :  { %v205_v30 = vld [vmem:[%s3593_s2 + $0x68] sm:$0xff]  ;;  %v207_v34 = vld [vmem:[%s3593_s2 + $0x78] sm:$0xff]  ;;  %v204_v36 = vld [vmem:[%s3593_s2 + $0x60] sm:$0xff] }
   0xa   :  { %2312 = vmatpush1.msk.msra.mxu0 %vm37_vm0, %v29_v15  ;;  %v3129_v33 = vpack.c.bf16 %v205_v30, %v201_v29  ;;  %v3142_v37 = vpack.c.bf16 %v207_v34, %v203_v31  ;;  %v202_v38 = vld [vmem:[%s3593_s2 + $0x50] sm:$0xff]  ;;  %v209_v40 = vld [vmem:[%s3593_s2 + $0x88] sm:$0xff]  ;;  %v211_v42 = vld [vmem:[%s3593_s2 + $0x98] sm:$0xff]  ;;  %v3166_v44 = vpack.c.bf16 %v204_v36, %v200_v35 }
   0xb   :  { %2315 = vmatpush1.msk.msra.mxu1 %vm37_vm0, %v31_v16  ;;  %2313 = vmatmul.mubr.msk.f32.vlgmr.msra.gmra.mrb[0].mxu0 %vm33_vm1, %v20_v17  ;;  %v206_v39 = vld [vmem:[%s3593_s2 + $0x70] sm:$0xff]  ;;  %v213_v41 = vld [vmem:[%s3593_s2 + $0xa8] sm:$0xff]  ;;  %v215_v43 = vld [vmem:[%s3593_s2 + $0xb8] sm:$0xff] }
   0xc   :  { %2575 = vmatprep.subr.bf16.mxu0 %v3102_v23  ;;  %2591 = vmatprep.subr.bf16.mxu1 %v3104_v24  ;;  %v3170_v45 = vpack.c.bf16 %v206_v39, %v202_v38  ;;  %v3172_v46 = vpack.c.bf16 %v213_v41, %v209_v40  ;;  %v208_v47 = vld [vmem:[%s3593_s2 + $0x80] sm:$0xff]  ;;  %v210_v49 = vld [vmem:[%s3593_s2 + $0x90] sm:$0xff]  ;;  %v3184_v50 = vpack.c.bf16 %v215_v43, %v211_v42  ;;  %v217_v52 = vld [vmem:[%s3593_s2 + $0xc8] sm:$0xff] }
   0xd   :  { %2316 = vmatmul.mubr.msk.f32.vlgmr.msra.gmra.mrb[0].mxu1 %vm33_vm1, %v20_v17  ;;  %2577 = vmatpush1.bf16.msra.mxu0 %v3115_v28  ;;  %v212_v48 = vld [vmem:[%s3593_s2 + $0xa0] sm:$0xff]  ;;  %v214_v51 = vld [vmem:[%s3593_s2 + $0xb0] sm:$0xff]  ;;  %v221_v53 = vld [vmem:[%s3593_s2 + $0xe8] sm:$0xff] }
   0xe   :  { %2593 = vmatpush1.bf16.msra.mxu1 %v3127_v32  ;;  %2579 = vmatprep.subr.bf16.mxu0 %v3129_v33  ;;  %v219_v54 = vld [vmem:[%s3593_s2 + $0xd8] sm:$0xff]  ;;  %v3204_v56 = vpack.c.bf16 %v212_v48, %v208_v47  ;;  %v3208_v57 = vpack.c.bf16 %v214_v51, %v210_v49  ;;  %v3210_v58 = vpack.c.bf16 %v221_v53, %v217_v52  ;;  %v216_v59 = vld [vmem:[%s3593_s2 + $0xc0] sm:$0xff]  ;;  %v218_v62 = vld [vmem:[%s3593_s2 + $0xd0] sm:$0xff] }
   0xf   :  { %2595 = vmatprep.subr.bf16.mxu1 %v3142_v37  ;;  %292 = vmatprep.mubr.f32.mxu0 %v3011_v3  ;;  %v223_v55 = vld [vmem:[%s3593_s2 + $0xf8] sm:$0xff]  ;;  %v220_v60 = vld [vmem:[%s3593_s2 + $0xe0] sm:$0xff]  ;;  %v222_v63 = vld [vmem:[%s3593_s2 + $0xf0] sm:$0xff] }
  0x10   :  { %363 = vmatprep.mubr.f32.mxu1 %v3011_v3  ;;  %v3219_v61 = vpack.c.bf16 %v223_v55, %v219_v54  ;;  %v3228_v0 = vpack.c.bf16 %v220_v60, %v216_v59  ;;  %v3232_v1 = vpack.c.bf16 %v222_v63, %v218_v62  ;;  %v392_v2 = vld [vmem:[%s3594_s3] sm:$0xff]  ;;  %v393_v4 = vld [vmem:[%s3594_s3 + $0x8] sm:$0xff]  ;;  %v394_v7 = vld [vmem:[%s3594_s3 + $0x10] sm:$0xff] }
  0x11   :  { %2581 = vmatpush1.bf16.msra.mxu0 %v3166_v44  ;;  %v3254_v5 = vpack.c.bf16 %v393_v4, %v392_v2  ;;  %v395_v8 = vld [vmem:[%s3594_s3 + $0x18] sm:$0xff]  ;;  %v396_v10 = vld [vmem:[%s3594_s3 + $0x20] sm:$0xff]  ;;  %v397_v11 = vld [vmem:[%s3594_s3 + $0x28] sm:$0xff] }
  0x12   :  { %2597 = vmatpush1.bf16.msra.mxu1 %v3170_v45  ;;  %2583 = vmatprep.subr.bf16.mxu0 %v3172_v46  ;;  %v3266_v9 = vpack.c.bf16 %v395_v8, %v394_v7  ;;  %v3276_v12 = vpack.c.bf16 %v397_v11, %v396_v10  ;;  %v398_v13 = vld [vmem:[%s3594_s3 + $0x30] sm:$0xff]  ;;  %v399_v14 = vld [vmem:[%s3594_s3 + $0x38] sm:$0xff] }
  0x13   :  { %2599 = vmatprep.subr.bf16.mxu1 %v3184_v50  ;;  %v3286_v15 = vpack.c.bf16 %v399_v14, %v398_v13 }
  0x15   :  { %2585 = vmatpush1.bf16.msra.mxu0 %v3204_v56 }
  0x16   :  { %2601 = vmatpush1.bf16.msra.mxu1 %v3208_v57  ;;  %2587 = vmatprep.subr.bf16.mxu0 %v3210_v58 }
  0x17   :  { %2603 = vmatprep.subr.bf16.mxu1 %v3219_v61 }
  0x19   :  { %2589 = vmatpush1.bf16.msra.mxu0 %v3228_v0 }
  0x1a   :  { %2605 = vmatpush1.bf16.msra.mxu1 %v3232_v1  ;;  %2606 = vmatprep.subr.bf16.mxu0 %v3012_v6 }
  0x1b   :  { %2619 = vmatprep.subr.bf16.mxu1 %v3102_v23 }
  0x1c   :  { %293 = vmatmul.mubr.f32.vlgmr.msra.gmra.mrb[2].mxu0 %v3011_v3 }
  0x1d   :  { %364 = vmatmul.mubr.f32.vlgmr.msra.gmra.mrb[2].mxu1 %v3011_v3  ;;  %2608 = vmatpush3.bf16.msra.mxu0 %v3254_v5 }
  0x1e   :  { %2621 = vmatpush1.bf16.msra.mxu1 %v3115_v28  ;;  %537 = vmatprep.mubr.f32.mxu1 %v3011_v3 }
  0x1f   :  { %2623 = vmatprep.subr.bf16.mxu1 %v3129_v33  ;;  %2609 = vmatprep.subr.bf16.mxu0 %v3012_v6 }
  0x20   :  { %2430 = vmatprep.mubr.msk.f32.mxu0 %vm3013_vm2, %v3011_v3 }
  0x21   :  { %2611 = vmatpush3.bf16.msra.mxu0 %v3266_v9 }
  0x22   :  { %2625 = vmatpush1.bf16.msra.mxu1 %v3166_v44  ;;  %2612 = vmatprep.subr.bf16.mxu0 %v3012_v6 }
  0x23   :  { %2627 = vmatprep.subr.bf16.mxu1 %v3172_v46 }
  0x25   :  { %2614 = vmatpush3.bf16.msra.mxu0 %v3276_v12 }
  0x26   :  { %2629 = vmatpush1.bf16.msra.mxu1 %v3204_v56  ;;  %2615 = vmatprep.subr.bf16.mxu0 %v3012_v6 }
  0x27   :  { %2631 = vmatprep.subr.bf16.mxu1 %v3210_v58 }
  0x29   :  { %2617 = vmatpush3.bf16.msra.mxu0 %v3286_v15 }
  0x2a   :  { %2633 = vmatpush1.bf16.msra.mxu1 %v3228_v0  ;;  %2635 = vmatprep.subr.bf16.mxu0 %v3104_v24 }
  0x2b   :  { %2650 = vmatprep.subr.bf16.mxu1 %v3012_v6 }
  0xde   :  { %v3292_v16 = vpop.f32.mrb[0].mxu0 }
  0xdf   :  { %v3294_v17 = vpop.f32.mrb[1].mxu0 }
  0xe0   :  { %v3296_v18 = vpop.f32.mrb[0].mxu1 }
  0xe1   :  { %v3298_v19 = vpop.f32.mrb[1].mxu1 }
  0xef   :  { %v294_v20 = vpop.f32.mrb[2].mxu0 }
  0xf0   :  { %v370_v21 = vadd.f32 %v294_v20, %v3292_v16  ;;  %v365_v22 = vpop.f32.mrb[2].mxu1  ;;  %v296_v25 = vpop.f32.mrb[3].mxu0 }
  0xf1   :  { %v372_v26 = vadd.f32 %v365_v22, %v3296_v18  ;;  %v371_v27 = vadd.f32 %v296_v25, %v3294_v17  ;;  %v367_v29 = vpop.f32.mrb[3].mxu1 }
  0xf2   :  { %v374_v30 = vmul.f32 0.5, %v370_v21  ;;  %v373_v31 = vadd.f32 %v367_v29, %v3298_v19 }
  0xf3   :  { %v378_v34 = vmul.f32 0.5, %v371_v27 }
  0xf4   :  { %2929 = vtanh.f32 %v374_v30  ;;  %v383_v35 = vmul.f32 0.5, %v373_v31 }
  0xf5   :  { %2931 = vtanh.f32 %v378_v34 }
  0xf6   :  { %2933 = vtanh.f32 %v372_v26 }
  0xf7   :  { %2935 = vtanh.f32 %v383_v35 }
  0xfe   :  { %v2930_v36 = vpop.eup %2929 }
  0xff   :  { %v2932_v38 = vpop.eup %2931  ;;  %v376_v39 = vmul.f32 0.5, %v2930_v36 }
 0x100   :  { %v380_v40 = vmul.f32 0.5, %v2932_v38  ;;  %v2934_v42 = vpop.eup %2933 }
 0x101   :  { %v377_v41 = vadd.f32 0.5, %v376_v39  ;;  %v2936_v51 = vpop.eup %2935 }
 0x102   :  { %v381_v43 = vadd.f32 0.5, %v380_v40  ;;  %v385_v52 = vmul.f32 0.5, %v2936_v51 }
 0x103   :  { %v388_v47 = vmul.f32 %v2934_v42, %v377_v41 }
 0x104   :  { %v387_v48 = vmul.f32 0.0, %v381_v43  ;;  %v386_v53 = vadd.f32 0.5, %v385_v52 }
 0x106   :  { %v3304_v49 = vadd.f32 %v388_v47, %v387_v48 }
 0x108   :  { %2937 = vtanh.f32 %v3304_v49  ;;  %v645_v29 = vrot.slane %v3304_v49, 7 }
 0x112   :  { %v2938_v54 = vpop.eup %2937 }
 0x113   :  { %v391_v55 = vmul.f32 %v2938_v54, %v386_v53 }
 0x115   :  { %2431 = vmatmul.mubr.msk.f32.vlgmr.msra.gmra.mrb[4].mxu0 %vm224_vm3, %v391_v55  ;;  %2318 = vmatmul.mubr.msk.f32.vlgmr.msra.gmra.mrb[4].mxu1 %vm224_vm3, %v391_v55 }
 0x116   :  { %2637 = vmatpush1.bf16.msra.mxu0 %v3127_v32  ;;  %608 = vmatprep.mubr.f32.mxu0 %v3011_v3 }
 0x117   :  { %2639 = vmatprep.subr.bf16.mxu0 %v3142_v37  ;;  %2652 = vmatpush3.bf16.msra.mxu1 %v3254_v5 }
 0x118   :  { %2653 = vmatprep.subr.bf16.mxu1 %v3012_v6  ;;  %2449 = vmatprep.mubr.msk.f32.mxu1 %vm3013_vm2, %v3011_v3 }
 0x11a   :  { %2641 = vmatpush1.bf16.msra.mxu0 %v3170_v45 }
 0x11b   :  { %2643 = vmatprep.subr.bf16.mxu0 %v3184_v50  ;;  %2655 = vmatpush3.bf16.msra.mxu1 %v3266_v9 }
 0x11c   :  { %2656 = vmatprep.subr.bf16.mxu1 %v3012_v6 }
 0x11e   :  { %2645 = vmatpush1.bf16.msra.mxu0 %v3208_v57 }
 0x11f   :  { %2647 = vmatprep.subr.bf16.mxu0 %v3219_v61  ;;  %2658 = vmatpush3.bf16.msra.mxu1 %v3276_v12 }
 0x120   :  { %2659 = vmatprep.subr.bf16.mxu1 %v3012_v6 }
 0x122   :  { %2649 = vmatpush1.bf16.msra.mxu0 %v3232_v1 }
 0x123   :  { %2663 = vmatprep.subr.bf16.mxu0 %v3102_v23  ;;  %2661 = vmatpush3.bf16.msra.mxu1 %v3286_v15 }
 0x124   :  { %2679 = vmatprep.subr.bf16.mxu1 %v3104_v24 }
 0x125   :  { %2319 = vmatmul.mubr.msk.f32.vlgmr.msra.gmra.mrb[6].mxu0 %vm224_vm3, %v391_v55 }
 0x126   :  { %2665 = vmatpush1.bf16.msra.mxu0 %v3115_v28  ;;  %790 = vmatprep.mubr.f32.mxu0 %v3011_v3 }
 0x127   :  { %2667 = vmatprep.subr.bf16.mxu0 %v3129_v33 }
 0x12a   :  { %2669 = vmatpush1.bf16.msra.mxu0 %v3166_v44 }
 0x12b   :  { %2671 = vmatprep.subr.bf16.mxu0 %v3172_v46 }
 0x12e   :  { %2673 = vmatpush1.bf16.msra.mxu0 %v3204_v56 }
 0x12f   :  { %2675 = vmatprep.subr.bf16.mxu0 %v3210_v58 }
 0x132   :  { %2677 = vmatpush1.bf16.msra.mxu0 %v3228_v0 }
 0x133   :  { %2694 = vmatprep.subr.bf16.mxu0 %v3012_v6 }
 0x1e8   :  { %v3338_v59 = vpop.f32.mrb[4].mxu0  ;;  %v539_v60 = vpop.f32.mrb[4].mxu1 }
 0x1e9   :  { %v619_v62 = vrot.slane %v539_v60, 7  ;;  %v2432_v63 = vpop.f32.mrb[5].mxu0  ;;  %v541_v2 = vpop.f32.mrb[5].mxu1 }
 0x1ea   :  { %v620_v4 = vrot.slane %v541_v2, 7 }
 0x1eb   :  { %v627_v7 = vadd.f32 %v619_v62, %v3292_v16 }
 0x1ec   :  { %v628_v8 = vadd.f32 %v620_v4, %v3294_v17 }
 0x1ed   :  { %v631_v11 = vmul.f32 0.5, %v627_v7 }
 0x1ee   :  { %v635_v10 = vmul.f32 0.5, %v628_v8 }
 0x1f0   :  { %2939 = vtanh.f32 %v635_v10 }
 0x1f1   :  { %2941 = vtanh.f32 %v631_v11 }
 0x1f8   :  { %v610_v13 = vpop.f32.mrb[6].mxu0 }
 0x1f9   :  { %v621_v14 = vrot.slane %v610_v13, 7  ;;  %v612_v20 = vpop.f32.mrb[7].mxu0 }
 0x1fa   :  { %v2940_v21 = vpop.eup %2939  ;;  %v622_v22 = vrot.slane %v612_v20, 7 }
 0x1fb   :  { %v637_v25 = vmul.f32 0.5, %v2940_v21  ;;  %v629_v26 = vadd.f32 %v621_v14, %v3296_v18  ;;  %v2942_v31 = vpop.eup %2941 }
 0x1fc   :  { %v630_v27 = vadd.f32 %v622_v22, %v3298_v19  ;;  %v633_v36 = vmul.f32 0.5, %v2942_v31 }
 0x1fd   :  { %v638_v30 = vadd.f32 0.5, %v637_v25  ;;  %2943 = vtanh.f32 %v629_v26 }
 0x1fe   :  { %v640_v35 = vmul.f32 0.5, %v630_v27  ;;  %v634_v38 = vadd.f32 0.5, %v633_v36 }
 0x1ff   :  { %v647_v34 = vmul.f32 %v645_v29, %v638_v30 }
 0x200   :  { %2945 = vtanh.f32 %v640_v35 }
 0x207   :  { %v2944_v39 = vpop.eup %2943 }
 0x208   :  { %v648_v40 = vmul.f32 %v2944_v39, %v634_v38 }
 0x20a   :  { %v3345_v41 = vadd.f32 %v648_v40, %v647_v34  ;;  %v2946_v42 = vpop.eup %2945 }
 0x20b   :  { %v642_v43 = vmul.f32 0.5, %v2946_v42 }
 0x20c   :  { %2947 = vtanh.f32 %v3345_v41  ;;  %v898_v27 = vrot.slane %v3345_v41, 7 }
 0x20d   :  { %v643_v47 = vadd.f32 0.5, %v642_v43 }
 0x216   :  { %v2948_v48 = vpop.eup %2947 }
 0x217   :  { %v651_v51 = vmul.f32 %v2948_v48, %v643_v47 }
 0x219   :  { %v653_v49 = vrot.slane %v651_v51, 1 }
 0x21b   :  { %2450 = vmatmul.mubr.msk.f32.vlgmr.msra.gmra.mrb[6].mxu1 %vm224_vm3, %v653_v49  ;;  %2321 = vmatmul.mubr.msk.f32.vlgmr.msra.gmra.mrb[8].mxu0 %vm224_vm3, %v653_v49 }
 0x21c   :  { %2681 = vmatpush1.bf16.msra.mxu1 %v3127_v32  ;;  %861 = vmatprep.mubr.f32.mxu1 %v3011_v3 }
 0x21d   :  { %2683 = vmatprep.subr.bf16.mxu1 %v3142_v37  ;;  %2696 = vmatpush3.bf16.msra.mxu0 %v3254_v5 }
 0x21e   :  { %2697 = vmatprep.subr.bf16.mxu0 %v3012_v6  ;;  %2468 = vmatprep.mubr.msk.f32.mxu0 %vm3013_vm2, %v3011_v3 }
 0x220   :  { %2685 = vmatpush1.bf16.msra.mxu1 %v3170_v45 }
 0x221   :  { %2687 = vmatprep.subr.bf16.mxu1 %v3184_v50  ;;  %2699 = vmatpush3.bf16.msra.mxu0 %v3266_v9 }
 0x222   :  { %2700 = vmatprep.subr.bf16.mxu0 %v3012_v6 }
 0x224   :  { %2689 = vmatpush1.bf16.msra.mxu1 %v3208_v57 }
 0x225   :  { %2691 = vmatprep.subr.bf16.mxu1 %v3219_v61  ;;  %2702 = vmatpush3.bf16.msra.mxu0 %v3276_v12 }
 0x226   :  { %2703 = vmatprep.subr.bf16.mxu0 %v3012_v6 }
 0x228   :  { %2693 = vmatpush1.bf16.msra.mxu1 %v3232_v1 }
 0x229   :  { %2707 = vmatprep.subr.bf16.mxu1 %v3102_v23  ;;  %2705 = vmatpush3.bf16.msra.mxu0 %v3286_v15 }
 0x22a   :  { %2723 = vmatprep.subr.bf16.mxu0 %v3104_v24 }
 0x22b   :  { %2322 = vmatmul.mubr.msk.f32.vlgmr.msra.gmra.mrb[8].mxu1 %vm224_vm3, %v653_v49 }
 0x22c   :  { %2709 = vmatpush1.bf16.msra.mxu1 %v3115_v28  ;;  %1043 = vmatprep.mubr.f32.mxu1 %v3011_v3 }
 0x22d   :  { %2711 = vmatprep.subr.bf16.mxu1 %v3129_v33 }
 0x230   :  { %2713 = vmatpush1.bf16.msra.mxu1 %v3166_v44 }
 0x231   :  { %2715 = vmatprep.subr.bf16.mxu1 %v3172_v46 }
 0x234   :  { %2717 = vmatpush1.bf16.msra.mxu1 %v3204_v56 }
 0x235   :  { %2719 = vmatprep.subr.bf16.mxu1 %v3210_v58 }
 0x238   :  { %2721 = vmatpush1.bf16.msra.mxu1 %v3228_v0 }
 0x239   :  { %2738 = vmatprep.subr.bf16.mxu1 %v3012_v6 }
 0x2ee   :  { %v722_v52 = vpop.f32.mrb[6].mxu1  ;;  %v792_v53 = vpop.f32.mrb[8].mxu0 }
 0x2ef   :  { %v2245_v54 = vrot.slane %v722_v52, 7  ;;  %v872_v55 = vrot.slane %v792_v53, 6  ;;  %v2451_v60 = vpop.f32.mrb[7].mxu1  ;;  %v794_v62 = vpop.f32.mrb[9].mxu0 }
 0x2f0   :  { %v873_v63 = vrot.slane %v794_v62, 6 }
 0x2f1   :  { %v3381_v2 = vsel %vm37_vm0, %v3338_v59, %v2245_v54  ;;  %v880_v4 = vadd.f32 %v872_v55, %v3292_v16 }
 0x2f2   :  { %v881_v7 = vadd.f32 %v873_v63, %v3294_v17 }
 0x2f3   :  { %v884_v10 = vmul.f32 0.5, %v880_v4 }
 0x2f4   :  { %v888_v8 = vmul.f32 0.5, %v881_v7 }
 0x2f6   :  { %2949 = vtanh.f32 %v888_v8 }
 0x2f7   :  { %2951 = vtanh.f32 %v884_v10 }
 0x2fe   :  { %v863_v11 = vpop.f32.mrb[8].mxu1 }
 0x2ff   :  { %v874_v13 = vrot.slane %v863_v11, 6  ;;  %v865_v14 = vpop.f32.mrb[9].mxu1 }
 0x300   :  { %v2950_v20 = vpop.eup %2949  ;;  %v875_v21 = vrot.slane %v865_v14, 6 }
 0x301   :  { %v890_v22 = vmul.f32 0.5, %v2950_v20  ;;  %v882_v25 = vadd.f32 %v874_v13, %v3296_v18  ;;  %v2952_v29 = vpop.eup %2951 }
 0x302   :  { %v883_v26 = vadd.f32 %v875_v21, %v3298_v19  ;;  %v886_v34 = vmul.f32 0.5, %v2952_v29 }
 0x303   :  { %v891_v59 = vadd.f32 0.5, %v890_v22  ;;  %2953 = vtanh.f32 %v882_v25 }
 0x304   :  { %v893_v31 = vmul.f32 0.5, %v883_v26  ;;  %v887_v35 = vadd.f32 0.5, %v886_v34 }
 0x305   :  { %v900_v30 = vmul.f32 %v898_v27, %v891_v59 }
 0x306   :  { %2955 = vtanh.f32 %v893_v31 }
 0x30d   :  { %v2954_v36 = vpop.eup %2953 }
 0x30e   :  { %v901_v38 = vmul.f32 %v2954_v36, %v887_v35 }
 0x310   :  { %v3388_v39 = vadd.f32 %v901_v38, %v900_v30  ;;  %v2956_v40 = vpop.eup %2955 }
 0x311   :  { %v895_v42 = vmul.f32 0.5, %v2956_v40 }
 0x312   :  { %2957 = vtanh.f32 %v3388_v39  ;;  %v1151_v26 = vrot.slane %v3388_v39, 7 }
 0x313   :  { %v896_v43 = vadd.f32 0.5, %v895_v42 }
 0x31c   :  { %v2958_v47 = vpop.eup %2957 }
 0x31d   :  { %v904_v48 = vmul.f32 %v2958_v47, %v896_v43 }
 0x31f   :  { %v906_v51 = vrot.slane %v904_v48, 2 }
 0x321   :  { %2469 = vmatmul.mubr.msk.f32.vlgmr.msra.gmra.mrb[10].mxu0 %vm224_vm3, %v906_v51  ;;  %2324 = vmatmul.mubr.msk.f32.vlgmr.msra.gmra.mrb[10].mxu1 %vm224_vm3, %v906_v51 }
 0x322   :  { %2725 = vmatpush1.bf16.msra.mxu0 %v3127_v32  ;;  %1114 = vmatprep.mubr.f32.mxu0 %v3011_v3 }
 0x323   :  { %2727 = vmatprep.subr.bf16.mxu0 %v3142_v37  ;;  %2740 = vmatpush3.bf16.msra.mxu1 %v3254_v5 }
 0x324   :  { %2741 = vmatprep.subr.bf16.mxu1 %v3012_v6  ;;  %2487 = vmatprep.mubr.msk.f32.mxu1 %vm3013_vm2, %v3011_v3 }
 0x326   :  { %2729 = vmatpush1.bf16.msra.mxu0 %v3170_v45 }
 0x327   :  { %2731 = vmatprep.subr.bf16.mxu0 %v3184_v50  ;;  %2743 = vmatpush3.bf16.msra.mxu1 %v3266_v9 }
 0x328   :  { %2744 = vmatprep.subr.bf16.mxu1 %v3012_v6 }
 0x32a   :  { %2733 = vmatpush1.bf16.msra.mxu0 %v3208_v57 }
 0x32b   :  { %2735 = vmatprep.subr.bf16.mxu0 %v3219_v61  ;;  %2746 = vmatpush3.bf16.msra.mxu1 %v3276_v12 }
 0x32c   :  { %2747 = vmatprep.subr.bf16.mxu1 %v3012_v6 }
 0x32e   :  { %2737 = vmatpush1.bf16.msra.mxu0 %v3232_v1 }
 0x32f   :  { %2751 = vmatprep.subr.bf16.mxu0 %v3102_v23  ;;  %2749 = vmatpush3.bf16.msra.mxu1 %v3286_v15 }
 0x330   :  { %2767 = vmatprep.subr.bf16.mxu1 %v3104_v24 }
 0x331   :  { %2325 = vmatmul.mubr.msk.f32.vlgmr.msra.gmra.mrb[12].mxu0 %vm224_vm3, %v906_v51 }
 0x332   :  { %2753 = vmatpush1.bf16.msra.mxu0 %v3115_v28  ;;  %1296 = vmatprep.mubr.f32.mxu0 %v3011_v3 }
 0x333   :  { %2755 = vmatprep.subr.bf16.mxu0 %v3129_v33 }
 0x336   :  { %2757 = vmatpush1.bf16.msra.mxu0 %v3166_v44 }
 0x337   :  { %2759 = vmatprep.subr.bf16.mxu0 %v3172_v46 }
 0x33a   :  { %2761 = vmatpush1.bf16.msra.mxu0 %v3204_v56 }
 0x33b   :  { %2763 = vmatprep.subr.bf16.mxu0 %v3210_v58 }
 0x33e   :  { %2765 = vmatpush1.bf16.msra.mxu0 %v3228_v0 }
 0x33f   :  { %2782 = vmatprep.subr.bf16.mxu0 %v3012_v6 }
 0x3f4   :  { %v975_v41 = vpop.f32.mrb[10].mxu0  ;;  %v1045_v49 = vpop.f32.mrb[10].mxu1 }
 0x3f5   :  { %v2248_v52 = vrot.slane %v975_v41, 6  ;;  %v1125_v53 = vrot.slane %v1045_v49, 5  ;;  %v2470_v54 = vpop.f32.mrb[11].mxu0  ;;  %v1047_v55 = vpop.f32.mrb[11].mxu1 }
 0x3f6   :  { %v1126_v60 = vrot.slane %v1047_v55, 5 }
 0x3f7   :  { %v3423_v62 = vsel %vm2266_vm4, %v3381_v2, %v2248_v52  ;;  %v1133_v63 = vadd.f32 %v1125_v53, %v3292_v16 }
 0x3f8   :  { %v1134_v4 = vadd.f32 %v1126_v60, %v3294_v17 }
 0x3f9   :  { %v1137_v8 = vmul.f32 0.5, %v1133_v63 }
 0x3fa   :  { %v1141_v7 = vmul.f32 0.5, %v1134_v4 }
 0x3fc   :  { %2959 = vtanh.f32 %v1141_v7 }
 0x3fd   :  { %2961 = vtanh.f32 %v1137_v8 }
 0x404   :  { %v1116_v10 = vpop.f32.mrb[12].mxu0 }
 0x405   :  { %v1127_v11 = vrot.slane %v1116_v10, 5  ;;  %v1118_v13 = vpop.f32.mrb[13].mxu0 }
 0x406   :  { %v2960_v14 = vpop.eup %2959  ;;  %v1128_v20 = vrot.slane %v1118_v13, 5 }
 0x407   :  { %v1143_v21 = vmul.f32 0.5, %v2960_v14  ;;  %v1135_v22 = vadd.f32 %v1127_v11, %v3296_v18  ;;  %v2962_v59 = vpop.eup %2961 }
 0x408   :  { %v1136_v25 = vadd.f32 %v1128_v20, %v3298_v19  ;;  %v1139_v30 = vmul.f32 0.5, %v2962_v59 }
 0x409   :  { %v1144_v2 = vadd.f32 0.5, %v1143_v21  ;;  %2963 = vtanh.f32 %v1135_v22 }
 0x40a   :  { %v1146_v29 = vmul.f32 0.5, %v1136_v25  ;;  %v1140_v31 = vadd.f32 0.5, %v1139_v30 }
 0x40b   :  { %v1153_v27 = vmul.f32 %v1151_v26, %v1144_v2 }
 0x40c   :  { %2965 = vtanh.f32 %v1146_v29 }
 0x413   :  { %v2964_v34 = vpop.eup %2963 }
 0x414   :  { %v1154_v35 = vmul.f32 %v2964_v34, %v1140_v31 }
 0x416   :  { %v3430_v36 = vadd.f32 %v1154_v35, %v1153_v27  ;;  %v2966_v38 = vpop.eup %2965 }
 0x417   :  { %v1148_v40 = vmul.f32 0.5, %v2966_v38 }
 0x418   :  { %2967 = vtanh.f32 %v3430_v36  ;;  %v1404_v25 = vrot.slane %v3430_v36, 7 }
 0x419   :  { %v1149_v42 = vadd.f32 0.5, %v1148_v40 }
 0x422   :  { %v2968_v43 = vpop.eup %2967 }
 0x423   :  { %v1157_v47 = vmul.f32 %v2968_v43, %v1149_v42 }
 0x425   :  { %v1159_v48 = vrot.slane %v1157_v47, 3 }
 0x427   :  { %2488 = vmatmul.mubr.msk.f32.vlgmr.msra.gmra.mrb[12].mxu1 %vm224_vm3, %v1159_v48  ;;  %2327 = vmatmul.mubr.msk.f32.vlgmr.msra.gmra.mrb[14].mxu0 %vm224_vm3, %v1159_v48 }
 0x428   :  { %2769 = vmatpush1.bf16.msra.mxu1 %v3127_v32  ;;  %1367 = vmatprep.mubr.f32.mxu1 %v3011_v3 }
 0x429   :  { %2771 = vmatprep.subr.bf16.mxu1 %v3142_v37  ;;  %2784 = vmatpush3.bf16.msra.mxu0 %v3254_v5 }
 0x42a   :  { %2785 = vmatprep.subr.bf16.mxu0 %v3012_v6  ;;  %2506 = vmatprep.mubr.msk.f32.mxu0 %vm3013_vm2, %v3011_v3 }
 0x42c   :  { %2773 = vmatpush1.bf16.msra.mxu1 %v3170_v45 }
 0x42d   :  { %2775 = vmatprep.subr.bf16.mxu1 %v3184_v50  ;;  %2787 = vmatpush3.bf16.msra.mxu0 %v3266_v9 }
 0x42e   :  { %2788 = vmatprep.subr.bf16.mxu0 %v3012_v6 }
 0x430   :  { %2777 = vmatpush1.bf16.msra.mxu1 %v3208_v57 }
 0x431   :  { %2779 = vmatprep.subr.bf16.mxu1 %v3219_v61  ;;  %2790 = vmatpush3.bf16.msra.mxu0 %v3276_v12 }
 0x432   :  { %2791 = vmatprep.subr.bf16.mxu0 %v3012_v6 }
 0x434   :  { %2781 = vmatpush1.bf16.msra.mxu1 %v3232_v1 }
 0x435   :  { %2795 = vmatprep.subr.bf16.mxu1 %v3102_v23  ;;  %2793 = vmatpush3.bf16.msra.mxu0 %v3286_v15 }
 0x436   :  { %2811 = vmatprep.subr.bf16.mxu0 %v3104_v24 }
 0x437   :  { %2328 = vmatmul.mubr.msk.f32.vlgmr.msra.gmra.mrb[14].mxu1 %vm224_vm3, %v1159_v48 }
 0x438   :  { %2797 = vmatpush1.bf16.msra.mxu1 %v3115_v28  ;;  %1549 = vmatprep.mubr.f32.mxu1 %v3011_v3 }
 0x439   :  { %2799 = vmatprep.subr.bf16.mxu1 %v3129_v33 }
 0x43c   :  { %2801 = vmatpush1.bf16.msra.mxu1 %v3166_v44 }
 0x43d   :  { %2803 = vmatprep.subr.bf16.mxu1 %v3172_v46 }
 0x440   :  { %2805 = vmatpush1.bf16.msra.mxu1 %v3204_v56 }
 0x441   :  { %2807 = vmatprep.subr.bf16.mxu1 %v3210_v58 }
 0x444   :  { %2809 = vmatpush1.bf16.msra.mxu1 %v3228_v0 }
 0x445   :  { %2826 = vmatprep.subr.bf16.mxu1 %v3012_v6 }
 0x4fa   :  { %v1228_v39 = vpop.f32.mrb[12].mxu1  ;;  %v1298_v51 = vpop.f32.mrb[14].mxu0 }
 0x4fb   :  { %v2251_v41 = vrot.slane %v1228_v39, 5  ;;  %v1378_v49 = vrot.slane %v1298_v51, 4  ;;  %v2489_v52 = vpop.f32.mrb[13].mxu1  ;;  %v1300_v53 = vpop.f32.mrb[15].mxu0 }
 0x4fc   :  { %v1379_v54 = vrot.slane %v1300_v53, 4 }
 0x4fd   :  { %v3465_v55 = vsel %vm2268_vm5, %v3423_v62, %v2251_v41  ;;  %v1386_v60 = vadd.f32 %v1378_v49, %v3292_v16 }
 0x4fe   :  { %v1387_v63 = vadd.f32 %v1379_v54, %v3294_v17 }
 0x4ff   :  { %v1390_v7 = vmul.f32 0.5, %v1386_v60 }
 0x500   :  { %v1394_v4 = vmul.f32 0.5, %v1387_v63 }
 0x502   :  { %2969 = vtanh.f32 %v1394_v4 }
 0x503   :  { %2971 = vtanh.f32 %v1390_v7 }
 0x50a   :  { %v1369_v8 = vpop.f32.mrb[14].mxu1 }
 0x50b   :  { %v1380_v10 = vrot.slane %v1369_v8, 4  ;;  %v1371_v11 = vpop.f32.mrb[15].mxu1 }
 0x50c   :  { %v2970_v13 = vpop.eup %2969  ;;  %v1381_v14 = vrot.slane %v1371_v11, 4 }
 0x50d   :  { %v1396_v20 = vmul.f32 0.5, %v2970_v13  ;;  %v1388_v21 = vadd.f32 %v1380_v10, %v3296_v18  ;;  %v2972_v2 = vpop.eup %2971 }
 0x50e   :  { %v1389_v22 = vadd.f32 %v1381_v14, %v3298_v19  ;;  %v1392_v27 = vmul.f32 0.5, %v2972_v2 }
 0x50f   :  { %v1397_v62 = vadd.f32 0.5, %v1396_v20  ;;  %2973 = vtanh.f32 %v1388_v21 }
 0x510   :  { %v1399_v59 = vmul.f32 0.5, %v1389_v22  ;;  %v1393_v29 = vadd.f32 0.5, %v1392_v27 }
 0x511   :  { %v1406_v26 = vmul.f32 %v1404_v25, %v1397_v62 }
 0x512   :  { %2975 = vtanh.f32 %v1399_v59 }
 0x519   :  { %v2974_v30 = vpop.eup %2973 }
 0x51a   :  { %v1407_v31 = vmul.f32 %v2974_v30, %v1393_v29 }
 0x51c   :  { %v3472_v34 = vadd.f32 %v1407_v31, %v1406_v26  ;;  %v2976_v35 = vpop.eup %2975 }
 0x51d   :  { %v1401_v38 = vmul.f32 0.5, %v2976_v35 }
 0x51e   :  { %2977 = vtanh.f32 %v3472_v34  ;;  %v1657_v22 = vrot.slane %v3472_v34, 7 }
 0x51f   :  { %v1402_v40 = vadd.f32 0.5, %v1401_v38 }
 0x528   :  { %v2978_v42 = vpop.eup %2977 }
 0x529   :  { %v1410_v43 = vmul.f32 %v2978_v42, %v1402_v40 }
 0x52b   :  { %v1412_v47 = vrot.slane %v1410_v43, 4 }
 0x52d   :  { %2507 = vmatmul.mubr.msk.f32.vlgmr.msra.gmra.mrb[16].mxu0 %vm224_vm3, %v1412_v47  ;;  %2330 = vmatmul.mubr.msk.f32.vlgmr.msra.gmra.mrb[16].mxu1 %vm224_vm3, %v1412_v47 }
 0x52e   :  { %2813 = vmatpush1.bf16.msra.mxu0 %v3127_v32  ;;  %1620 = vmatprep.mubr.f32.mxu0 %v3011_v3 }
 0x52f   :  { %2815 = vmatprep.subr.bf16.mxu0 %v3142_v37  ;;  %2828 = vmatpush3.bf16.msra.mxu1 %v3254_v5 }
 0x530   :  { %2829 = vmatprep.subr.bf16.mxu1 %v3012_v6  ;;  %2525 = vmatprep.mubr.msk.f32.mxu1 %vm3013_vm2, %v3011_v3 }
 0x532   :  { %2817 = vmatpush1.bf16.msra.mxu0 %v3170_v45 }
 0x533   :  { %2819 = vmatprep.subr.bf16.mxu0 %v3184_v50  ;;  %2831 = vmatpush3.bf16.msra.mxu1 %v3266_v9 }
 0x534   :  { %2832 = vmatprep.subr.bf16.mxu1 %v3012_v6 }
 0x536   :  { %2821 = vmatpush1.bf16.msra.mxu0 %v3208_v57 }
 0x537   :  { %2823 = vmatprep.subr.bf16.mxu0 %v3219_v61  ;;  %2834 = vmatpush3.bf16.msra.mxu1 %v3276_v12 }
 0x538   :  { %2835 = vmatprep.subr.bf16.mxu1 %v3012_v6 }
 0x53a   :  { %2825 = vmatpush1.bf16.msra.mxu0 %v3232_v1 }
 0x53b   :  { %2839 = vmatprep.subr.bf16.mxu0 %v3102_v23  ;;  %2837 = vmatpush3.bf16.msra.mxu1 %v3286_v15 }
 0x53c   :  { %2855 = vmatprep.subr.bf16.mxu1 %v3104_v24 }
 0x53d   :  { %2331 = vmatmul.mubr.msk.f32.vlgmr.msra.gmra.mrb[18].mxu0 %vm224_vm3, %v1412_v47 }
 0x53e   :  { %2841 = vmatpush1.bf16.msra.mxu0 %v3115_v28  ;;  %1802 = vmatprep.mubr.f32.mxu0 %v3011_v3 }
 0x53f   :  { %2843 = vmatprep.subr.bf16.mxu0 %v3129_v33 }
 0x542   :  { %2845 = vmatpush1.bf16.msra.mxu0 %v3166_v44 }
 0x543   :  { %2847 = vmatprep.subr.bf16.mxu0 %v3172_v46 }
 0x546   :  { %2849 = vmatpush1.bf16.msra.mxu0 %v3204_v56 }
 0x547   :  { %2851 = vmatprep.subr.bf16.mxu0 %v3210_v58 }
 0x54a   :  { %2853 = vmatpush1.bf16.msra.mxu0 %v3228_v0 }
 0x54b   :  { %2870 = vmatprep.subr.bf16.mxu0 %v3012_v6 }
 0x600   :  { %v1481_v36 = vpop.f32.mrb[16].mxu0  ;;  %v1551_v48 = vpop.f32.mrb[16].mxu1 }
 0x601   :  { %v2254_v39 = vrot.slane %v1481_v36, 4  ;;  %v1631_v51 = vrot.slane %v1551_v48, 3  ;;  %v2508_v41 = vpop.f32.mrb[17].mxu0  ;;  %v1553_v49 = vpop.f32.mrb[17].mxu1 }
 0x602   :  { %v1632_v52 = vrot.slane %v1553_v49, 3 }
 0x603   :  { %v3507_v53 = vsel %vm2270_vm6, %v3465_v55, %v2254_v39  ;;  %v1639_v54 = vadd.f32 %v1631_v51, %v3292_v16 }
 0x604   :  { %v1640_v60 = vadd.f32 %v1632_v52, %v3294_v17 }
 0x605   :  { %v1643_v4 = vmul.f32 0.5, %v1639_v54 }
 0x606   :  { %v1647_v63 = vmul.f32 0.5, %v1640_v60 }
 0x608   :  { %2979 = vtanh.f32 %v1647_v63 }
 0x609   :  { %2981 = vtanh.f32 %v1643_v4 }
 0x610   :  { %v1622_v7 = vpop.f32.mrb[18].mxu0 }
 0x611   :  { %v1633_v8 = vrot.slane %v1622_v7, 3  ;;  %v1624_v10 = vpop.f32.mrb[19].mxu0 }
 0x612   :  { %v2980_v11 = vpop.eup %2979  ;;  %v1634_v13 = vrot.slane %v1624_v10, 3 }
 0x613   :  { %v1649_v14 = vmul.f32 0.5, %v2980_v11  ;;  %v1641_v20 = vadd.f32 %v1633_v8, %v3296_v18  ;;  %v2982_v62 = vpop.eup %2981 }
 0x614   :  { %v1642_v21 = vadd.f32 %v1634_v13, %v3298_v19  ;;  %v1645_v26 = vmul.f32 0.5, %v2982_v62 }
 0x615   :  { %v1650_v55 = vadd.f32 0.5, %v1649_v14  ;;  %2983 = vtanh.f32 %v1641_v20 }
 0x616   :  { %v1652_v2 = vmul.f32 0.5, %v1642_v21  ;;  %v1646_v59 = vadd.f32 0.5, %v1645_v26 }
 0x617   :  { %v1659_v25 = vmul.f32 %v1657_v22, %v1650_v55 }
 0x618   :  { %2985 = vtanh.f32 %v1652_v2 }
 0x61f   :  { %v2984_v27 = vpop.eup %2983 }
 0x620   :  { %v1660_v29 = vmul.f32 %v2984_v27, %v1646_v59 }
 0x622   :  { %v3514_v30 = vadd.f32 %v1660_v29, %v1659_v25  ;;  %v2986_v31 = vpop.eup %2985 }
 0x623   :  { %v1654_v35 = vmul.f32 0.5, %v2986_v31 }
 0x624   :  { %2987 = vtanh.f32 %v3514_v30 }
 0x625   :  { %v1655_v38 = vadd.f32 0.5, %v1654_v35 }
 0x62e   :  { %v2988_v40 = vpop.eup %2987 }
 0x62f   :  { %v1663_v42 = vmul.f32 %v2988_v40, %v1655_v38 }
 0x631   :  { %v1665_v43 = vrot.slane %v1663_v42, 5 }
 0x633   :  { %2526 = vmatmul.mubr.msk.f32.vlgmr.msra.gmra.mrb[18].mxu1 %vm224_vm3, %v1665_v43  ;;  %2333 = vmatmul.mubr.msk.f32.vlgmr.msra.gmra.mrb[20].mxu0 %vm224_vm3, %v1665_v43 }
 0x634   :  { %2857 = vmatpush1.bf16.msra.mxu1 %v3127_v32  ;;  %1873 = vmatprep.mubr.f32.mxu1 %v3011_v3 }
 0x635   :  { %2859 = vmatprep.subr.bf16.mxu1 %v3142_v37  ;;  %2872 = vmatpush3.bf16.msra.mxu0 %v3254_v5 }
 0x636   :  { %2873 = vmatprep.subr.bf16.mxu0 %v3012_v6  ;;  %2544 = vmatprep.mubr.msk.f32.mxu0 %vm3013_vm2, %v3011_v3 }
 0x638   :  { %2861 = vmatpush1.bf16.msra.mxu1 %v3170_v45 }
 0x639   :  { %2863 = vmatprep.subr.bf16.mxu1 %v3184_v50  ;;  %2875 = vmatpush3.bf16.msra.mxu0 %v3266_v9 }
 0x63a   :  { %2876 = vmatprep.subr.bf16.mxu0 %v3012_v6 }
 0x63c   :  { %2865 = vmatpush1.bf16.msra.mxu1 %v3208_v57 }
 0x63d   :  { %2867 = vmatprep.subr.bf16.mxu1 %v3219_v61  ;;  %2878 = vmatpush3.bf16.msra.mxu0 %v3276_v12 }
 0x63e   :  { %2879 = vmatprep.subr.bf16.mxu0 %v3012_v6 }
 0x640   :  { %2869 = vmatpush1.bf16.msra.mxu1 %v3232_v1 }
 0x641   :  { %2883 = vmatprep.subr.bf16.mxu1 %v3102_v23  ;;  %2881 = vmatpush3.bf16.msra.mxu0 %v3286_v15 }
 0x642   :  { %2899 = vmatprep.subr.bf16.mxu0 %v3104_v24 }
 0x643   :  { %2334 = vmatmul.mubr.msk.f32.vlgmr.msra.gmra.mrb[20].mxu1 %vm224_vm3, %v1665_v43 }
 0x644   :  { %2885 = vmatpush1.bf16.msra.mxu1 %v3115_v28  ;;  %2055 = vmatprep.mubr.f32.mxu1 %v3011_v3 }
 0x645   :  { %2887 = vmatprep.subr.bf16.mxu1 %v3129_v33 }
 0x648   :  { %2889 = vmatpush1.bf16.msra.mxu1 %v3166_v44 }
 0x649   :  { %2891 = vmatprep.subr.bf16.mxu1 %v3172_v46 }
 0x64c   :  { %2893 = vmatpush1.bf16.msra.mxu1 %v3204_v56 }
 0x64d   :  { %2895 = vmatprep.subr.bf16.mxu1 %v3210_v58 }
 0x650   :  { %2897 = vmatpush1.bf16.msra.mxu1 %v3228_v0 }
 0x651   :  { %2914 = vmatprep.subr.bf16.mxu1 %v3012_v6 }
 0x706   :  { %v1734_v23 = vpop.f32.mrb[18].mxu1  ;;  %v1804_v24 = vpop.f32.mrb[20].mxu0 }
 0x707   :  { %v2257_v28 = vrot.slane %v1734_v23, 3  ;;  %v1884_v34 = vrot.slane %v1804_v24, 2  ;;  %v2527_v47 = vpop.f32.mrb[19].mxu1  ;;  %v1806_v36 = vpop.f32.mrb[21].mxu0 }
 0x708   :  { %v1885_v33 = vrot.slane %v1806_v36, 2 }
 0x709   :  { %v2273_v44 = vsel %vm2272_vm7, %v3507_v53, %v2257_v28  ;;  %v1892_v46 = vadd.f32 %v1884_v34, %v3292_v16  ;;  %v1910_v53 = vrot.slane %v3514_v30, 7 }
 0x70a   :  { %v1893_v56 = vadd.f32 %v1885_v33, %v3294_v17 }
 0x70b   :  { %v1896_v58 = vmul.f32 0.5, %v1892_v46 }
 0x70c   :  { %v1900_v48 = vmul.f32 0.5, %v1893_v56 }
 0x70e   :  { %2989 = vtanh.f32 %v1900_v48 }
 0x70f   :  { %2991 = vtanh.f32 %v1896_v58  ;;  %v2339_v58 = vld [vmem:[%s3595_s4] ss:$0 sm:$0xff] }
 0x716   :  { %v1875_v0 = vpop.f32.mrb[20].mxu1 }
 0x717   :  { %v1886_v39 = vrot.slane %v1875_v0, 2  ;;  %v1877_v51 = vpop.f32.mrb[21].mxu1 }
 0x718   :  { %v2990_v41 = vpop.eup %2989  ;;  %v1887_v49 = vrot.slane %v1877_v51, 2  ;;  %v2340_v51 = vld [vmem:[%s3595_s4 + $0x1] ss:$0 sm:$0xff] }
 0x719   :  { %v1902_v52 = vmul.f32 0.5, %v2990_v41  ;;  %v1894_v54 = vadd.f32 %v1886_v39, %v3296_v18  ;;  %v2992_v4 = vpop.eup %2991 }
 0x71a   :  { %v1895_v60 = vadd.f32 %v1887_v49, %v3298_v19  ;;  %v1898_v10 = vmul.f32 0.5, %v2992_v4 }
 0x71b   :  { %v1903_v63 = vadd.f32 0.5, %v1902_v52  ;;  %2993 = vtanh.f32 %v1894_v54  ;;  %v2341_v54 = vld [vmem:[%s3595_s4 + $0x2] ss:$0 sm:$0xff] }
 0x71c   :  { %v1905_v8 = vmul.f32 0.5, %v1895_v60  ;;  %v1899_v11 = vadd.f32 0.5, %v1898_v10 }
 0x71d   :  { %v1912_v7 = vmul.f32 %v1910_v53, %v1903_v63 }
 0x71e   :  { %2995 = vtanh.f32 %v1905_v8 }
 0x725   :  { %v2994_v13 = vpop.eup %2993 }
 0x726   :  { %v1913_v14 = vmul.f32 %v2994_v13, %v1899_v11 }
 0x728   :  { %v1914_v20 = vadd.f32 %v1913_v14, %v1912_v7  ;;  %v2996_v21 = vpop.eup %2995 }
 0x729   :  { %v1907_v55 = vmul.f32 0.5, %v2996_v21 }
 0x72a   :  { %2997 = vtanh.f32 %v1914_v20  ;;  %v2163_v40 = vrot.slane %v1914_v20, 7 }
 0x72b   :  { %v1908_v22 = vadd.f32 0.5, %v1907_v55 }
 0x734   :  { %v2998_v62 = vpop.eup %2997 }
 0x735   :  { %v1916_v25 = vmul.f32 %v2998_v62, %v1908_v22 }
 0x737   :  { %v1918_v2 = vrot.slane %v1916_v25, 6 }
 0x739   :  { %2545 = vmatmul.mubr.msk.f32.vlgmr.msra.gmra.mrb[22].mxu0 %vm224_vm3, %v1918_v2  ;;  %2336 = vmatmul.mubr.msk.f32.vlgmr.msra.gmra.mrb[22].mxu1 %vm224_vm3, %v1918_v2 }
 0x73a   :  { %2901 = vmatpush1.bf16.msra.mxu0 %v3127_v32  ;;  %2126 = vmatprep.mubr.f32.mxu0 %v3011_v3 }
 0x73b   :  { %2903 = vmatprep.subr.bf16.mxu0 %v3142_v37  ;;  %2916 = vmatpush3.bf16.msra.mxu1 %v3254_v5 }
 0x73c   :  { %2917 = vmatprep.subr.bf16.mxu1 %v3012_v6  ;;  %2563 = vmatprep.mubr.msk.f32.mxu1 %vm3013_vm2, %v3011_v3 }
 0x73e   :  { %2905 = vmatpush1.bf16.msra.mxu0 %v3170_v45 }
 0x73f   :  { %2907 = vmatprep.subr.bf16.mxu0 %v3184_v50  ;;  %2919 = vmatpush3.bf16.msra.mxu1 %v3266_v9 }
 0x740   :  { %2920 = vmatprep.subr.bf16.mxu1 %v3012_v6 }
 0x742   :  { %2909 = vmatpush1.bf16.msra.mxu0 %v3208_v57 }
 0x743   :  { %2911 = vmatprep.subr.bf16.mxu0 %v3219_v61  ;;  %2922 = vmatpush3.bf16.msra.mxu1 %v3276_v12 }
 0x744   :  { %2923 = vmatprep.subr.bf16.mxu1 %v3012_v6 }
 0x746   :  { %2913 = vmatpush1.bf16.msra.mxu0 %v3232_v1 }
 0x747   :  { %2925 = vmatpush3.bf16.msra.mxu1 %v3286_v15 }
 0x749   :  { %2337 = vmatmul.mubr.msk.f32.vlgmr.msra.gmra.mrb[24].mxu0 %vm224_vm3, %v1918_v2 }
 0x80c   :  { %v1987_v3 = vpop.f32.mrb[22].mxu0  ;;  %v2057_v32 = vpop.f32.mrb[22].mxu1 }
 0x80d   :  { %v2260_v37 = vrot.slane %v1987_v3, 2  ;;  %v2137_v45 = vrot.slane %v2057_v32, 1  ;;  %v2546_v50 = vpop.f32.mrb[23].mxu0  ;;  %v2059_v5 = vpop.f32.mrb[23].mxu1 }
 0x80e   :  { %v2138_v57 = vrot.slane %v2059_v5, 1 }
 0x80f   :  { %v2275_v9 = vsel %vm2274_vm8, %v2273_v44, %v2260_v37  ;;  %v2145_v61 = vadd.f32 %v2137_v45, %v3292_v16 }
 0x810   :  { %v2146_v12 = vadd.f32 %v2138_v57, %v3294_v17 }
 0x811   :  { %v2149_v1 = vmul.f32 0.5, %v2145_v61 }
 0x812   :  { %v2153_v6 = vmul.f32 0.5, %v2146_v12 }
 0x814   :  { %2999 = vtanh.f32 %v2153_v6 }
 0x815   :  { %3001 = vtanh.f32 %v2149_v1 }
 0x81c   :  { %v2128_v15 = vpop.f32.mrb[24].mxu0 }
 0x81d   :  { %v2139_v26 = vrot.slane %v2128_v15, 1  ;;  %v2130_v59 = vpop.f32.mrb[25].mxu0 }
 0x81e   :  { %v3000_v27 = vpop.eup %2999  ;;  %v2140_v29 = vrot.slane %v2130_v59, 1 }
 0x81f   :  { %v2155_v30 = vmul.f32 0.5, %v3000_v27  ;;  %v2147_v31 = vadd.f32 %v2139_v26, %v3296_v18  ;;  %v3002_v16 = vpop.eup %3001 }
 0x820   :  { %v2148_v35 = vadd.f32 %v2140_v29, %v3298_v19  ;;  %v2151_v43 = vmul.f32 0.5, %v3002_v16 }
 0x821   :  { %v2156_v38 = vadd.f32 0.5, %v2155_v30  ;;  %3003 = vtanh.f32 %v2147_v31 }
 0x822   :  { %v2158_v17 = vmul.f32 0.5, %v2148_v35  ;;  %v2152_v23 = vadd.f32 0.5, %v2151_v43 }
 0x823   :  { %v2165_v42 = vmul.f32 %v2163_v40, %v2156_v38 }
 0x824   :  { %3005 = vtanh.f32 %v2158_v17 }
 0x82b   :  { %v3004_v24 = vpop.eup %3003 }
 0x82c   :  { %v2166_v28 = vmul.f32 %v3004_v24, %v2152_v23 }
 0x82e   :  { %v2167_v34 = vadd.f32 %v2166_v28, %v2165_v42  ;;  %v3006_v47 = vpop.eup %3005 }
 0x82f   :  { %v2160_v36 = vmul.f32 0.5, %v3006_v47 }
 0x830   :  { %3007 = vtanh.f32 %v2167_v34 }
 0x831   :  { %v2161_v33 = vadd.f32 0.5, %v2160_v36 }
 0x83a   :  { %v3008_v44 = vpop.eup %3007 }
 0x83b   :  { %v2169_v18 = vmul.f32 %v3008_v44, %v2161_v33 }
 0x83d   :  { %v2171_v46 = vrot.slane %v2169_v18, 7 }
 0x83f   :  { %2564 = vmatmul.mubr.msk.f32.vlgmr.msra.gmra.mrb[24].mxu1 %vm224_vm3, %v2171_v46 }
 0x912   :  { %v2240_v19 = vpop.f32.mrb[24].mxu1 }
 0x913   :  { %v2263_v56 = vrot.slane %v2240_v19, 1  ;;  %v2565_v48 = vpop.f32.mrb[25].mxu1 }
 0x915   :  { %v2277_v0 = vsel %vm2276_vm9, %v2275_v9, %v2263_v56 }
 0x916   :  { %v2285_v39 = vadd.f32 %v2339_v58, %v2277_v0 }
 0x918   :  { %v2286_v41 = vmax.f32 %v2285_v39, 0.0 }
 0x91a   :  { %v2291_v49 = vmul.f32 %v2340_v51, %v2286_v41 }
 0x91c   :  { %v2293_v52 = vsel %vm2292_vm10, %v2291_v49, 0.0 }
 0x91d   :  { %2294 = vadd.xlane.f32.xlu0 %v2293_v52 }
 0x9aa   :  { %v2295_v60 = vpop.xlane.xlu0 %2294 }
 0x9ab   :  { %v2300_v63 = vadd.f32 %v2341_v54, %v2295_v60 }
 0x9ad   :  { %v2301_v53 = vmul.f32 0.5, %v2300_v63 }
 0x9af   :  { %3009 = vtanh.f32 %v2301_v53 }
 0x9b9   :  { %v3010_v4 = vpop.eup %3009 }
 0x9ba   :  { %v2303_v7 = vmul.f32 0.5, %v3010_v4 }
 0x9bc   :  { %v2304_v8 = vadd.f32 0.5, %v2303_v7 }
 0x9be   :  { %2306 = vst.msk [vmem:[%s3596_s5] sm:$0xff] %vm2305_vm11, %v2304_v8 }

</bundles_post_ra>
